<compile_context>
chip_gen: v5e
topology: v5e:2x2
jax: 0.10.0
libtpu: 0.0.40
codegen_flags: <defaults>
</compile_context>

<pallas_src>
import math

import numpy as np
import jax
import jax.numpy as jnp
from jax import lax
from jax.experimental import pallas as pl
from jax.experimental.pallas import tpu as pltpu

PREC = lax.Precision.HIGHEST


# ----------------------------------------------------------------------------
# Haar (db1) filters — used only by the pure-JAX reference.
# ----------------------------------------------------------------------------
def haar_vectors():
    s = 1.0 / math.sqrt(2.0)
    dec_lo = np.array([s, s], np.float32)
    dec_hi = np.array([s, -s], np.float32)
    rec_lo = np.array([s, s], np.float32)
    rec_hi = np.array([s, -s], np.float32)
    dec_u = np.stack([dec_lo, dec_hi, dec_lo, dec_hi])
    dec_v = np.stack([dec_lo, dec_lo, dec_hi, dec_hi])
    rec_u = np.stack([rec_lo, rec_hi, rec_lo, rec_hi])
    rec_v = np.stack([rec_lo, rec_lo, rec_hi, rec_hi])
    return dec_u, dec_v, rec_u, rec_v


# ----------------------------------------------------------------------------
# Pallas kernel: one (batch, channel-tile) step in a (TC, H*W) lane layout.
# ----------------------------------------------------------------------------
def make_kernel(TC, H, W):
    HW = H * W

    def px(v, o):
        """y[..., p] = v[..., (p + o) mod HW]: flattened-spatial shift (wrapping rotate).

        Wrap-around is harmless: every call site either multiplies by a precomputed 0/1
        boundary-mask plane or never selects the wrapped positions (the DWT pair swaps).
        """
        amt = (-o) % HW
        if amt == 0:
            return v
        return pltpu.roll(v, amt, axis=1)

    def kernel(x_ref, pln_ref, par_ref, ww_ref, pw_ref, out_ref):
        f32 = jnp.float32
        ci = pl.program_id(1)

        x = x_ref[...]                    # (TC, HW)  lane-dense flattened spatial
        par = par_ref[...]                # (TC, 10)  base taps (*base_scale) + bias
        pln = pln_ref[...]                # (11, HW)  precomputed sign / mask planes

        rowsign, colsign, rcsign = pln[0:1], pln[1:2], pln[2:3]
        m_l1, m_r1, m_t1, m_b1 = pln[3:4], pln[4:5], pln[5:6], pln[6:7]
        m_l2, m_r2, m_t2, m_b2 = pln[7:8], pln[8:9], pln[9:10], pln[10:11]
        row_even = rowsign > 0.0
        col_even = colsign > 0.0

        def conv3x3(v, w, step, m_l, m_r, m_t, m_b):
            """Depthwise 3x3 'same' conv with taps `step` px apart; per-row taps w (R, 9).

            The 3 column-shifted copies are shared by all row taps, and the row shift
            commutes with the per-row-offset weighted sum: 4 rolls + 4 mask muls total.
            """
            cc = (m_l * px(v, -step), v, m_r * px(v, step))      # dj = -1, 0, +1
            inner = []
            for a in (-1, 0, 1):                                  # di
                acc = None
                for b in (-1, 0, 1):                              # dj
                    t = (a + 1) * 3 + (b + 1)
                    term = w[:, t:t + 1] * cc[b + 1]
                    acc = term if acc is None else acc + term
                inner.append(acc)
            return (inner[1]
                    + m_t * px(inner[0], -step * W)
                    + m_b * px(inner[2], step * W))

        # ---- base path: depthwise 3x3 + bias (base_scale folded in wrapper) -------
        base = conv3x3(x, par[:, 0:9], 1, m_l1, m_r1, m_t1, m_b1) + par[:, 9:10]

        # ---- Haar DWT (level 1), replicated full-res, bands stacked on sublanes ---
        rswap = jnp.where(row_even, px(x, W), px(x, -W))       # row-pair partner
        r_sum = x + rswap
        r_dif = rowsign * (x - rswap)
        st2 = jnp.concatenate([r_sum, r_dif], axis=0)           # (2*TC, HW)
        cswap = jnp.where(col_even, px(st2, 1), px(st2, -1))    # column-pair partner
        s_plus = st2 + cswap
        s_minus = colsign * (st2 - cswap)
        bands = jnp.concatenate([s_plus, s_minus], axis=0)      # (4*TC, HW): LL,LH,HL,HH

        # ---- depthwise 3x3 on all 4 bands at once (stride-2 taps) ------------------
        # wavelet_scale and the Haar 0.25 normalization are folded into ww (wrapper).
        wmat = jnp.concatenate([ww_ref[0], ww_ref[1], ww_ref[2], ww_ref[3]], axis=0)
        zz = conv3x3(bands, wmat, 2, m_l2, m_r2, m_t2, m_b2)    # (4*TC, HW)

        # ---- inverse Haar DWT ------------------------------------------------------
        x_tag = (zz[0:TC]
                 + rowsign * zz[TC:2 * TC]
                 + colsign * zz[2 * TC:3 * TC]
                 + rcsign * zz[3 * TC:4 * TC])

        # ---- residual sum + pointwise 1x1 partial product (accumulated over ci) ----
        y = base + x_tag                                         # (TC, HW)

        @pl.when(ci == 0)
        def _():
            out_ref[...] = jnp.zeros_like(out_ref)

        # NOTE: HIGHEST kept because the pointwise matmul is tiny at these C/Cout; for
        # production C/Cout >= 128 drop to default precision / bf16 per the perf review.
        out_ref[...] += jnp.dot(pw_ref[...], y, precision=PREC,
                                preferred_element_type=f32)      # (Cout, HW) lane-dense

    return kernel


# ----------------------------------------------------------------------------
# Wrapper: parameter folding/packing, precomputed planes, pallas_call.
# ----------------------------------------------------------------------------
def _pick_channel_tile(C, HW):
    # ~32 live f32 (row, HW) planes per channel row of working set; stay well under VMEM.
    budget_rows = max(8, (32 * 1024 * 1024) // (32 * HW * 4))
    if C <= 8 or C <= budget_rows:
        return C
    tc = min(C, (budget_rows // 8) * 8)
    while tc >= 8 and C % tc != 0:
        tc -= 8
    return tc if tc >= 8 and C % tc == 0 else C


def dwsep_wtconv2d(x, base_w, base_b, base_scale, wconv_w, wavelet_scale, pw_w,
                   *, channel_tile=None, vmem_limit_bytes=None):
    B, C, H, W = x.shape
    assert H % 2 == 0 and W % 2 == 0, "level-1 Haar DWT needs even spatial dims"
    Cout = pw_w.shape[0]
    HW = H * W

    TC = int(channel_tile) if channel_tile is not None else _pick_channel_tile(C, HW)
    if C % TC != 0 or not (TC == C or TC % 8 == 0):
        raise ValueError(f"channel_tile={TC} must divide C={C} and be a multiple of 8 (or == C)")
    nct = C // TC

    # Fold the scale modules / Haar normalization into the tap weights:
    #   par : (C, 10)   = base 3x3 taps * base_scale, bias * base_scale
    #   ww4 : (4, C, 9) = wavelet 3x3 taps * wavelet_scale * 0.25 (0.5 DWT * 0.5 IDWT), band-major
    #   pw3 : (nct, Cout, TC) pointwise weight, pre-split by channel tile
    bw = base_w.reshape(C, 9) * base_scale.reshape(C, 1)
    bb = (base_b * base_scale).reshape(C, 1)
    par = jnp.concatenate([bw, bb], axis=1).astype(jnp.float32)
    ww = wconv_w.reshape(C, 4, 9) * wavelet_scale.reshape(C, 4, 1) * 0.25
    ww4 = jnp.transpose(ww, (1, 0, 2)).astype(jnp.float32)
    pw3 = (pw_w[:, :, 0, 0].astype(jnp.float32)
           .reshape(Cout, nct, TC).transpose(1, 0, 2))

    # Precomputed sign / boundary-mask planes (one small DMA, fetched once, reused).
    r = np.arange(H)[:, None]
    c = np.arange(W)[None, :]
    one = np.ones((H, W), np.float32)
    rowsign = np.where(r % 2 == 0, 1.0, -1.0) * one
    colsign = np.where(c % 2 == 0, 1.0, -1.0) * one
    planes = np.stack([
        rowsign, colsign, rowsign * colsign,
        (c >= 1) * one, (c <= W - 2) * one, (r >= 1) * one, (r <= H - 2) * one,
        (c >= 2) * one, (c <= W - 3) * one, (r >= 2) * one, (r <= H - 3) * one,
    ]).reshape(11, HW).astype(np.float32)

    cp = dict(dimension_semantics=("parallel", "arbitrary"))
    if vmem_limit_bytes is not None:
        cp["vmem_limit_bytes"] = int(vmem_limit_bytes)

    out = pl.pallas_call(
        make_kernel(TC, H, W),
        out_shape=jax.ShapeDtypeStruct((B, Cout, HW), jnp.float32),
        grid=(B, nct),
        in_specs=[
            pl.BlockSpec((None, TC, HW), lambda b, ci: (b, ci, 0)),    # x (flattened spatial)
            pl.BlockSpec((11, HW), lambda b, ci: (0, 0)),              # sign / mask planes
            pl.BlockSpec((TC, 10), lambda b, ci: (ci, 0)),             # base taps + bias
            pl.BlockSpec((4, TC, 9), lambda b, ci: (0, ci, 0)),        # wavelet taps (band-major)
            pl.BlockSpec((None, Cout, TC), lambda b, ci: (ci, 0, 0)),  # pointwise weight tile
        ],
        out_specs=pl.BlockSpec((None, Cout, HW), lambda b, ci: (b, 0, 0)),
        compiler_params=pltpu.CompilerParams(**cp),
    )(x.reshape(B, C, HW).astype(jnp.float32), jnp.asarray(planes), par, ww4, pw3)
    return out.reshape(B, Cout, H, W)


# ----------------------------------------------------------------------------
# Pure-JAX reference (lax convolutions mirroring the PyTorch forward exactly).
# ----------------------------------------------------------------------------
def reference(x, base_w, base_b, base_scale, wconv_w, wavelet_scale, pw_w):
    B, C, H, W = x.shape
    dec_u, dec_v, rec_u, rec_v = haar_vectors()
    wt_2x2 = dec_u[:, :, None] * dec_v[:, None, :]    # (4,2,2) dec filters
    iwt_2x2 = rec_u[:, :, None] * rec_v[:, None, :]   # (4,2,2) rec filters
    wt_filter = jnp.asarray(np.tile(wt_2x2, (C, 1, 1))[:, None])          # (4C,1,2,2)
    iwt_flip = np.ascontiguousarray(iwt_2x2[:, ::-1, ::-1])
    w_iwt = jnp.asarray(np.broadcast_to(iwt_flip[None], (C, 4, 2, 2)).copy())

    dn = ('NCHW', 'OIHW', 'NCHW')

    def conv(inp, w, groups, stride=1, pad=0, lhs_dil=1):
        return lax.conv_general_dilated(
            inp, w, window_strides=(stride, stride),
            padding=((pad, pad), (pad, pad)),
            lhs_dilation=(lhs_dil, lhs_dil),
            dimension_numbers=dn, feature_group_count=groups,
            precision=PREC)

    z = conv(x, wt_filter, groups=C, stride=2)                                 # DWT
    zt = conv(z, wconv_w, groups=4 * C, pad=1) * wavelet_scale.reshape(1, 4 * C, 1, 1)
    x_tag = conv(zt, w_iwt, groups=C, pad=1, lhs_dil=2)                        # IDWT
    base = conv(x, base_w, groups=C, pad=1) + base_b.reshape(1, C, 1, 1)
    base = base * base_scale.reshape(1, C, 1, 1)
    y = base + x_tag
    return conv(y, pw_w, groups=1)                                             # pointwise 1x1


if __name__ == "__main__":
    B, C, H, W, Cout = 2, 16, 16, 16, 8

    key = jax.random.PRNGKey(0)
    kx, kbw, kbb, kww, kpw = jax.random.split(key, 5)
    x = jax.random.normal(kx, (B, C, H, W), jnp.float32)
    # Deterministic synthetic parameters (shapes per module __init__).
    base_w = 0.2 * jax.random.normal(kbw, (C, 1, 3, 3), jnp.float32)
    base_b = 0.1 * jax.random.normal(kbb, (C,), jnp.float32)
    wconv_w = 0.2 * jax.random.normal(kww, (4 * C, 1, 3, 3), jnp.float32)
    pw_w = 0.5 * jax.random.normal(kpw, (Cout, C, 1, 1), jnp.float32)
    base_scale = jnp.ones((C,), jnp.float32)               # _ScaleModule init 1.0
    wavelet_scale = jnp.full((4 * C,), 0.1, jnp.float32)   # _ScaleModule init 0.1

    # channel_tile=8 exercises the channel-reduction (accumulator) path with 2 tiles.
    out = dwsep_wtconv2d(x, base_w, base_b, base_scale, wconv_w, wavelet_scale, pw_w,
                         channel_tile=8)
    out = jax.block_until_ready(out)

    ref = jax.block_until_ready(
        reference(x, base_w, base_b, base_scale, wconv_w, wavelet_scale, pw_w))
    np.testing.assert_allclose(np.asarray(out), np.asarray(ref), rtol=2e-3, atol=2e-3)
    print("KERNEL_OK")
</pallas_src>

<mosaic_0001>
module attributes {stable_mosaic.version = 11 : i64} {
  func.func @kernel(%arg0: i32, %arg1: i32, %arg2: memref<1x8x256xf32, #tpu.memory_space<vmem>>, %arg3: memref<11x256xf32, #tpu.memory_space<vmem>>, %arg4: memref<8x10xf32, #tpu.memory_space<vmem>>, %arg5: memref<4x8x9xf32, #tpu.memory_space<vmem>>, %arg6: memref<1x8x8xf32, #tpu.memory_space<vmem>>, %arg7: memref<1x8x256xf32, #tpu.memory_space<vmem>>) attributes {dimension_semantics = [#tpu.dimension_semantics<parallel>, #tpu.dimension_semantics<arbitrary>], iteration_bounds = array<i64: 2, 2>, scalar_prefetch = 0 : i64, scratch_operands = 0 : i64, tpu.core_type = #tpu.core_type<tc>, window_params = [{transform_indices = @transform_0, window_bounds = array<i64: 1, 8, 256>}, {pipeline_mode = #tpu.pipeline_mode<synchronous>, transform_indices = @transform_1, window_bounds = array<i64: 11, 256>}, {transform_indices = @transform_2, window_bounds = array<i64: 8, 10>}, {transform_indices = @transform_3, window_bounds = array<i64: 4, 8, 9>}, {transform_indices = @transform_4, window_bounds = array<i64: 1, 8, 8>}, {transform_indices = @transform_5, window_bounds = array<i64: 1, 8, 256>}]} {
    %c0 = arith.constant 0 : index
    %c0_0 = arith.constant 0 : index
    %c0_1 = arith.constant 0 : index
    %0 = vector.load %arg2[%c0, %c0_0, %c0_1] : memref<1x8x256xf32, #tpu.memory_space<vmem>>, vector<1x8x256xf32>
    %1 = vector.shape_cast %0 : vector<1x8x256xf32> to vector<8x256xf32>
    %c0_2 = arith.constant 0 : index
    %c0_3 = arith.constant 0 : index
    %2 = vector.load %arg4[%c0_2, %c0_3] : memref<8x10xf32, #tpu.memory_space<vmem>>, vector<8x10xf32>
    %c0_4 = arith.constant 0 : index
    %c0_5 = arith.constant 0 : index
    %3 = vector.load %arg3[%c0_4, %c0_5] : memref<11x256xf32, #tpu.memory_space<vmem>>, vector<11x256xf32>
    %4 = vector.extract_strided_slice %3 {offsets = [0, 0], sizes = [1, 256], strides = [1, 1]} : vector<11x256xf32> to vector<1x256xf32>
    %5 = vector.extract_strided_slice %3 {offsets = [1, 0], sizes = [1, 256], strides = [1, 1]} : vector<11x256xf32> to vector<1x256xf32>
    %6 = vector.extract_strided_slice %3 {offsets = [2, 0], sizes = [1, 256], strides = [1, 1]} : vector<11x256xf32> to vector<1x256xf32>
    %7 = vector.extract_strided_slice %3 {offsets = [3, 0], sizes = [1, 256], strides = [1, 1]} : vector<11x256xf32> to vector<1x256xf32>
    %8 = vector.extract_strided_slice %3 {offsets = [4, 0], sizes = [1, 256], strides = [1, 1]} : vector<11x256xf32> to vector<1x256xf32>
    %9 = vector.extract_strided_slice %3 {offsets = [5, 0], sizes = [1, 256], strides = [1, 1]} : vector<11x256xf32> to vector<1x256xf32>
    %10 = vector.extract_strided_slice %3 {offsets = [6, 0], sizes = [1, 256], strides = [1, 1]} : vector<11x256xf32> to vector<1x256xf32>
    %11 = vector.extract_strided_slice %3 {offsets = [7, 0], sizes = [1, 256], strides = [1, 1]} : vector<11x256xf32> to vector<1x256xf32>
    %12 = vector.extract_strided_slice %3 {offsets = [8, 0], sizes = [1, 256], strides = [1, 1]} : vector<11x256xf32> to vector<1x256xf32>
    %13 = vector.extract_strided_slice %3 {offsets = [9, 0], sizes = [1, 256], strides = [1, 1]} : vector<11x256xf32> to vector<1x256xf32>
    %14 = vector.extract_strided_slice %3 {offsets = [10, 0], sizes = [1, 256], strides = [1, 1]} : vector<11x256xf32> to vector<1x256xf32>
    %cst = arith.constant 0.000000e+00 : f32
    %15 = vector.broadcast %cst : f32 to vector<1x256xf32>
    %16 = arith.cmpf ogt, %4, %15 : vector<1x256xf32>
    %cst_6 = arith.constant 0.000000e+00 : f32
    %17 = vector.broadcast %cst_6 : f32 to vector<1x256xf32>
    %18 = arith.cmpf ogt, %5, %17 : vector<1x256xf32>
    %19 = vector.extract_strided_slice %2 {offsets = [0, 0], sizes = [8, 9], strides = [1, 1]} : vector<8x10xf32> to vector<8x9xf32>
    %c1_i32 = arith.constant 1 : i32
    %20 = tpu.dynamic_rotate %1 by %c1_i32 dim 1 : vector<8x256xf32>, i32 -> vector<8x256xf32>
    %21 = vector.broadcast %7 : vector<1x256xf32> to vector<8x256xf32>
    %22 = arith.mulf %21, %20 : vector<8x256xf32>
    %c255_i32 = arith.constant 255 : i32
    %23 = tpu.dynamic_rotate %1 by %c255_i32 dim 1 : vector<8x256xf32>, i32 -> vector<8x256xf32>
    %24 = vector.broadcast %8 : vector<1x256xf32> to vector<8x256xf32>
    %25 = arith.mulf %24, %23 : vector<8x256xf32>
    %26 = vector.extract_strided_slice %19 {offsets = [0, 0], sizes = [8, 1], strides = [1, 1]} : vector<8x9xf32> to vector<8x1xf32>
    %27 = vector.broadcast %26 : vector<8x1xf32> to vector<8x256xf32>
    %28 = arith.mulf %27, %22 : vector<8x256xf32>
    %29 = vector.extract_strided_slice %19 {offsets = [0, 1], sizes = [8, 1], strides = [1, 1]} : vector<8x9xf32> to vector<8x1xf32>
    %30 = vector.broadcast %29 : vector<8x1xf32> to vector<8x256xf32>
    %31 = arith.mulf %30, %1 : vector<8x256xf32>
    %32 = arith.addf %28, %31 : vector<8x256xf32>
    %33 = vector.extract_strided_slice %19 {offsets = [0, 2], sizes = [8, 1], strides = [1, 1]} : vector<8x9xf32> to vector<8x1xf32>
    %34 = vector.broadcast %33 : vector<8x1xf32> to vector<8x256xf32>
    %35 = arith.mulf %34, %25 : vector<8x256xf32>
    %36 = arith.addf %32, %35 : vector<8x256xf32>
    %37 = vector.extract_strided_slice %19 {offsets = [0, 3], sizes = [8, 1], strides = [1, 1]} : vector<8x9xf32> to vector<8x1xf32>
    %38 = vector.broadcast %37 : vector<8x1xf32> to vector<8x256xf32>
    %39 = arith.mulf %38, %22 : vector<8x256xf32>
    %40 = vector.extract_strided_slice %19 {offsets = [0, 4], sizes = [8, 1], strides = [1, 1]} : vector<8x9xf32> to vector<8x1xf32>
    %41 = vector.broadcast %40 : vector<8x1xf32> to vector<8x256xf32>
    %42 = arith.mulf %41, %1 : vector<8x256xf32>
    %43 = arith.addf %39, %42 : vector<8x256xf32>
    %44 = vector.extract_strided_slice %19 {offsets = [0, 5], sizes = [8, 1], strides = [1, 1]} : vector<8x9xf32> to vector<8x1xf32>
    %45 = vector.broadcast %44 : vector<8x1xf32> to vector<8x256xf32>
    %46 = arith.mulf %45, %25 : vector<8x256xf32>
    %47 = arith.addf %43, %46 : vector<8x256xf32>
    %48 = vector.extract_strided_slice %19 {offsets = [0, 6], sizes = [8, 1], strides = [1, 1]} : vector<8x9xf32> to vector<8x1xf32>
    %49 = vector.broadcast %48 : vector<8x1xf32> to vector<8x256xf32>
    %50 = arith.mulf %49, %22 : vector<8x256xf32>
    %51 = vector.extract_strided_slice %19 {offsets = [0, 7], sizes = [8, 1], strides = [1, 1]} : vector<8x9xf32> to vector<8x1xf32>
    %52 = vector.broadcast %51 : vector<8x1xf32> to vector<8x256xf32>
    %53 = arith.mulf %52, %1 : vector<8x256xf32>
    %54 = arith.addf %50, %53 : vector<8x256xf32>
    %55 = vector.extract_strided_slice %19 {offsets = [0, 8], sizes = [8, 1], strides = [1, 1]} : vector<8x9xf32> to vector<8x1xf32>
    %56 = vector.broadcast %55 : vector<8x1xf32> to vector<8x256xf32>
    %57 = arith.mulf %56, %25 : vector<8x256xf32>
    %58 = arith.addf %54, %57 : vector<8x256xf32>
    %c16_i32 = arith.constant 16 : i32
    %59 = tpu.dynamic_rotate %36 by %c16_i32 dim 1 : vector<8x256xf32>, i32 -> vector<8x256xf32>
    %60 = vector.broadcast %9 : vector<1x256xf32> to vector<8x256xf32>
    %61 = arith.mulf %60, %59 : vector<8x256xf32>
    %62 = arith.addf %47, %61 : vector<8x256xf32>
    %c240_i32 = arith.constant 240 : i32
    %63 = tpu.dynamic_rotate %58 by %c240_i32 dim 1 : vector<8x256xf32>, i32 -> vector<8x256xf32>
    %64 = vector.broadcast %10 : vector<1x256xf32> to vector<8x256xf32>
    %65 = arith.mulf %64, %63 : vector<8x256xf32>
    %66 = arith.addf %62, %65 : vector<8x256xf32>
    %67 = vector.extract_strided_slice %2 {offsets = [0, 9], sizes = [8, 1], strides = [1, 1]} : vector<8x10xf32> to vector<8x1xf32>
    %68 = vector.broadcast %67 : vector<8x1xf32> to vector<8x256xf32>
    %69 = arith.addf %66, %68 : vector<8x256xf32>
    %c240_i32_7 = arith.constant 240 : i32
    %70 = tpu.dynamic_rotate %1 by %c240_i32_7 dim 1 : vector<8x256xf32>, i32 -> vector<8x256xf32>
    %c16_i32_8 = arith.constant 16 : i32
    %71 = tpu.dynamic_rotate %1 by %c16_i32_8 dim 1 : vector<8x256xf32>, i32 -> vector<8x256xf32>
    %72 = vector.shape_cast %16 : vector<1x256xi1> to vector<1x256xi1>
    %73 = vector.broadcast %72 : vector<1x256xi1> to vector<8x256xi1>
    %74 = arith.select %73, %70, %71 : vector<8x256xi1>, vector<8x256xf32>
    %75 = arith.addf %1, %74 : vector<8x256xf32>
    %76 = arith.subf %1, %74 : vector<8x256xf32>
    %77 = vector.broadcast %4 : vector<1x256xf32> to vector<8x256xf32>
    %78 = arith.mulf %77, %76 : vector<8x256xf32>
    %79 = tpu.concatenate %75, %78 in 0 : vector<8x256xf32>, vector<8x256xf32> -> vector<16x256xf32>
    %c255_i32_9 = arith.constant 255 : i32
    %80 = tpu.dynamic_rotate %79 by %c255_i32_9 dim 1 : vector<16x256xf32>, i32 -> vector<16x256xf32>
    %c1_i32_10 = arith.constant 1 : i32
    %81 = tpu.dynamic_rotate %79 by %c1_i32_10 dim 1 : vector<16x256xf32>, i32 -> vector<16x256xf32>
    %82 = vector.shape_cast %18 : vector<1x256xi1> to vector<1x256xi1>
    %83 = vector.broadcast %82 : vector<1x256xi1> to vector<16x256xi1>
    %84 = arith.select %83, %80, %81 : vector<16x256xi1>, vector<16x256xf32>
    %85 = arith.addf %79, %84 : vector<16x256xf32>
    %86 = arith.subf %79, %84 : vector<16x256xf32>
    %87 = vector.broadcast %5 : vector<1x256xf32> to vector<16x256xf32>
    %88 = arith.mulf %87, %86 : vector<16x256xf32>
    %89 = tpu.concatenate %85, %88 in 0 : vector<16x256xf32>, vector<16x256xf32> -> vector<32x256xf32>
    %c0_11 = arith.constant 0 : index
    %c0_12 = arith.constant 0 : index
    %c0_13 = arith.constant 0 : index
    %90 = vector.load %arg5[%c0_11, %c0_12, %c0_13] : memref<4x8x9xf32, #tpu.memory_space<vmem>>, vector<1x8x9xf32>
    %91 = vector.shape_cast %90 : vector<1x8x9xf32> to vector<8x9xf32>
    %c1 = arith.constant 1 : index
    %c0_14 = arith.constant 0 : index
    %c0_15 = arith.constant 0 : index
    %92 = vector.load %arg5[%c1, %c0_14, %c0_15] : memref<4x8x9xf32, #tpu.memory_space<vmem>>, vector<1x8x9xf32>
    %93 = vector.shape_cast %92 : vector<1x8x9xf32> to vector<8x9xf32>
    %c2 = arith.constant 2 : index
    %c0_16 = arith.constant 0 : index
    %c0_17 = arith.constant 0 : index
    %94 = vector.load %arg5[%c2, %c0_16, %c0_17] : memref<4x8x9xf32, #tpu.memory_space<vmem>>, vector<1x8x9xf32>
    %95 = vector.shape_cast %94 : vector<1x8x9xf32> to vector<8x9xf32>
    %c3 = arith.constant 3 : index
    %c0_18 = arith.constant 0 : index
    %c0_19 = arith.constant 0 : index
    %96 = vector.load %arg5[%c3, %c0_18, %c0_19] : memref<4x8x9xf32, #tpu.memory_space<vmem>>, vector<1x8x9xf32>
    %97 = vector.shape_cast %96 : vector<1x8x9xf32> to vector<8x9xf32>
    %98 = tpu.concatenate %91, %93, %95, %97 in 0 : vector<8x9xf32>, vector<8x9xf32>, vector<8x9xf32>, vector<8x9xf32> -> vector<32x9xf32>
    %c2_i32 = arith.constant 2 : i32
    %99 = tpu.dynamic_rotate %89 by %c2_i32 dim 1 : vector<32x256xf32>, i32 -> vector<32x256xf32>
    %100 = vector.broadcast %11 : vector<1x256xf32> to vector<32x256xf32>
    %101 = arith.mulf %100, %99 : vector<32x256xf32>
    %c254_i32 = arith.constant 254 : i32
    %102 = tpu.dynamic_rotate %89 by %c254_i32 dim 1 : vector<32x256xf32>, i32 -> vector<32x256xf32>
    %103 = vector.broadcast %12 : vector<1x256xf32> to vector<32x256xf32>
    %104 = arith.mulf %103, %102 : vector<32x256xf32>
    %105 = vector.extract_strided_slice %98 {offsets = [0, 0], sizes = [32, 1], strides = [1, 1]} : vector<32x9xf32> to vector<32x1xf32>
    %106 = vector.broadcast %105 : vector<32x1xf32> to vector<32x256xf32>
    %107 = arith.mulf %106, %101 : vector<32x256xf32>
    %108 = vector.extract_strided_slice %98 {offsets = [0, 1], sizes = [32, 1], strides = [1, 1]} : vector<32x9xf32> to vector<32x1xf32>
    %109 = vector.broadcast %108 : vector<32x1xf32> to vector<32x256xf32>
    %110 = arith.mulf %109, %89 : vector<32x256xf32>
    %111 = arith.addf %107, %110 : vector<32x256xf32>
    %112 = vector.extract_strided_slice %98 {offsets = [0, 2], sizes = [32, 1], strides = [1, 1]} : vector<32x9xf32> to vector<32x1xf32>
    %113 = vector.broadcast %112 : vector<32x1xf32> to vector<32x256xf32>
    %114 = arith.mulf %113, %104 : vector<32x256xf32>
    %115 = arith.addf %111, %114 : vector<32x256xf32>
    %116 = vector.extract_strided_slice %98 {offsets = [0, 3], sizes = [32, 1], strides = [1, 1]} : vector<32x9xf32> to vector<32x1xf32>
    %117 = vector.broadcast %116 : vector<32x1xf32> to vector<32x256xf32>
    %118 = arith.mulf %117, %101 : vector<32x256xf32>
    %119 = vector.extract_strided_slice %98 {offsets = [0, 4], sizes = [32, 1], strides = [1, 1]} : vector<32x9xf32> to vector<32x1xf32>
    %120 = vector.broadcast %119 : vector<32x1xf32> to vector<32x256xf32>
    %121 = arith.mulf %120, %89 : vector<32x256xf32>
    %122 = arith.addf %118, %121 : vector<32x256xf32>
    %123 = vector.extract_strided_slice %98 {offsets = [0, 5], sizes = [32, 1], strides = [1, 1]} : vector<32x9xf32> to vector<32x1xf32>
    %124 = vector.broadcast %123 : vector<32x1xf32> to vector<32x256xf32>
    %125 = arith.mulf %124, %104 : vector<32x256xf32>
    %126 = arith.addf %122, %125 : vector<32x256xf32>
    %127 = vector.extract_strided_slice %98 {offsets = [0, 6], sizes = [32, 1], strides = [1, 1]} : vector<32x9xf32> to vector<32x1xf32>
    %128 = vector.broadcast %127 : vector<32x1xf32> to vector<32x256xf32>
    %129 = arith.mulf %128, %101 : vector<32x256xf32>
    %130 = vector.extract_strided_slice %98 {offsets = [0, 7], sizes = [32, 1], strides = [1, 1]} : vector<32x9xf32> to vector<32x1xf32>
    %131 = vector.broadcast %130 : vector<32x1xf32> to vector<32x256xf32>
    %132 = arith.mulf %131, %89 : vector<32x256xf32>
    %133 = arith.addf %129, %132 : vector<32x256xf32>
    %134 = vector.extract_strided_slice %98 {offsets = [0, 8], sizes = [32, 1], strides = [1, 1]} : vector<32x9xf32> to vector<32x1xf32>
    %135 = vector.broadcast %134 : vector<32x1xf32> to vector<32x256xf32>
    %136 = arith.mulf %135, %104 : vector<32x256xf32>
    %137 = arith.addf %133, %136 : vector<32x256xf32>
    %c32_i32 = arith.constant 32 : i32
    %138 = tpu.dynamic_rotate %115 by %c32_i32 dim 1 : vector<32x256xf32>, i32 -> vector<32x256xf32>
    %139 = vector.broadcast %13 : vector<1x256xf32> to vector<32x256xf32>
    %140 = arith.mulf %139, %138 : vector<32x256xf32>
    %141 = arith.addf %126, %140 : vector<32x256xf32>
    %c224_i32 = arith.constant 224 : i32
    %142 = tpu.dynamic_rotate %137 by %c224_i32 dim 1 : vector<32x256xf32>, i32 -> vector<32x256xf32>
    %143 = vector.broadcast %14 : vector<1x256xf32> to vector<32x256xf32>
    %144 = arith.mulf %143, %142 : vector<32x256xf32>
    %145 = arith.addf %141, %144 : vector<32x256xf32>
    %146 = vector.extract_strided_slice %145 {offsets = [0, 0], sizes = [8, 256], strides = [1, 1]} : vector<32x256xf32> to vector<8x256xf32>
    %147 = vector.extract_strided_slice %145 {offsets = [8, 0], sizes = [8, 256], strides = [1, 1]} : vector<32x256xf32> to vector<8x256xf32>
    %148 = vector.broadcast %4 : vector<1x256xf32> to vector<8x256xf32>
    %149 = arith.mulf %148, %147 : vector<8x256xf32>
    %150 = arith.addf %146, %149 : vector<8x256xf32>
    %151 = vector.extract_strided_slice %145 {offsets = [16, 0], sizes = [8, 256], strides = [1, 1]} : vector<32x256xf32> to vector<8x256xf32>
    %152 = vector.broadcast %5 : vector<1x256xf32> to vector<8x256xf32>
    %153 = arith.mulf %152, %151 : vector<8x256xf32>
    %154 = arith.addf %150, %153 : vector<8x256xf32>
    %155 = vector.extract_strided_slice %145 {offsets = [24, 0], sizes = [8, 256], strides = [1, 1]} : vector<32x256xf32> to vector<8x256xf32>
    %156 = vector.broadcast %6 : vector<1x256xf32> to vector<8x256xf32>
    %157 = arith.mulf %156, %155 : vector<8x256xf32>
    %158 = arith.addf %154, %157 : vector<8x256xf32>
    %159 = arith.addf %69, %158 : vector<8x256xf32>
    %c0_i32 = arith.constant 0 : i32
    %160 = arith.cmpi eq, %arg1, %c0_i32 : i32
    %161 = arith.extui %160 : i1 to i32
    %c0_i32_20 = arith.constant 0 : i32
    %162 = arith.cmpi ne, %161, %c0_i32_20 : i32
    scf.if %162 {
      %cst_31 = arith.constant 0.000000e+00 : f32
      %172 = vector.broadcast %cst_31 : f32 to vector<8x256xf32>
      %c0_32 = arith.constant 0 : index
      %c0_33 = arith.constant 0 : index
      %c0_34 = arith.constant 0 : index
      %173 = vector.load %arg7[%c0_32, %c0_33, %c0_34] : memref<1x8x256xf32, #tpu.memory_space<vmem>>, vector<1x8x256xf32>
      %174 = vector.shape_cast %173 : vector<1x8x256xf32> to vector<8x256xf32>
      %175 = vector.shape_cast %172 : vector<8x256xf32> to vector<1x8x256xf32>
      tpu.vector_store %arg7[%c0_32, %c0_33, %c0_34], %175 {strides = array<i32>} : memref<1x8x256xf32, #tpu.memory_space<vmem>>, vector<1x8x256xf32>,
    } else {
    }
    %c0_21 = arith.constant 0 : index
    %c0_22 = arith.constant 0 : index
    %c0_23 = arith.constant 0 : index
    %163 = vector.load %arg7[%c0_21, %c0_22, %c0_23] : memref<1x8x256xf32, #tpu.memory_space<vmem>>, vector<1x8x256xf32>
    %164 = vector.shape_cast %163 : vector<1x8x256xf32> to vector<8x256xf32>
    %c0_24 = arith.constant 0 : index
    %c0_25 = arith.constant 0 : index
    %c0_26 = arith.constant 0 : index
    %165 = vector.load %arg6[%c0_24, %c0_25, %c0_26] : memref<1x8x8xf32, #tpu.memory_space<vmem>>, vector<1x8x8xf32>
    %166 = vector.shape_cast %165 : vector<1x8x8xf32> to vector<8x8xf32>
    %cst_27 = arith.constant dense<0.000000e+00> : vector<8x256xf32>
    %167 = tpu.matmul %166, %159, %cst_27 {dimension_numbers = #tpu.dot_dimension_numbers<[1], [0], [0], [1], [0, 0, 1, 1], [], []>, precision = #tpu.contract_precision<fp32>} : vector<8x8xf32>, vector<8x256xf32>, vector<8x256xf32> -> vector<8x256xf32>
    %168 = arith.addf %164, %167 : vector<8x256xf32>
    %c0_28 = arith.constant 0 : index
    %c0_29 = arith.constant 0 : index
    %c0_30 = arith.constant 0 : index
    %169 = vector.load %arg7[%c0_28, %c0_29, %c0_30] : memref<1x8x256xf32, #tpu.memory_space<vmem>>, vector<1x8x256xf32>
    %170 = vector.shape_cast %169 : vector<1x8x256xf32> to vector<8x256xf32>
    %171 = vector.shape_cast %168 : vector<8x256xf32> to vector<1x8x256xf32>
    tpu.vector_store %arg7[%c0_28, %c0_29, %c0_30], %171 {strides = array<i32>} : memref<1x8x256xf32, #tpu.memory_space<vmem>>, vector<1x8x256xf32>,
    return
  }
  func.func @transform_0(%arg0: i32, %arg1: i32) -> (i32, i32, i32) {
    %c0_i32 = arith.constant 0 : i32
    %c0_i32_0 = arith.constant 0 : i32
    return %arg0, %arg1, %c0_i32 : i32, i32, i32
  }
  func.func @transform_1(%arg0: i32, %arg1: i32) -> (i32, i32) {
    %c0_i32 = arith.constant 0 : i32
    %c0_i32_0 = arith.constant 0 : i32
    %c0_i32_1 = arith.constant 0 : i32
    return %c0_i32, %c0_i32_0 : i32, i32
  }
  func.func @transform_2(%arg0: i32, %arg1: i32) -> (i32, i32) {
    %c0_i32 = arith.constant 0 : i32
    %c0_i32_0 = arith.constant 0 : i32
    return %arg1, %c0_i32 : i32, i32
  }
  func.func @transform_3(%arg0: i32, %arg1: i32) -> (i32, i32, i32) {
    %c0_i32 = arith.constant 0 : i32
    %c0_i32_0 = arith.constant 0 : i32
    %c0_i32_1 = arith.constant 0 : i32
    return %c0_i32, %arg1, %c0_i32_0 : i32, i32, i32
  }
  func.func @transform_4(%arg0: i32, %arg1: i32) -> (i32, i32, i32) {
    %c0_i32 = arith.constant 0 : i32
    %c0_i32_0 = arith.constant 0 : i32
    %c0_i32_1 = arith.constant 0 : i32
    return %arg1, %c0_i32, %c0_i32_0 : i32, i32, i32
  }
  func.func @transform_5(%arg0: i32, %arg1: i32) -> (i32, i32, i32) {
    %c0_i32 = arith.constant 0 : i32
    %c0_i32_0 = arith.constant 0 : i32
    %c0_i32_1 = arith.constant 0 : i32
    return %arg0, %c0_i32, %c0_i32_0 : i32, i32, i32
  }
}

</mosaic_0001>

<bundles_post_ra>
// kernel: tpu_custom_call.1
= control target key start
LH: loop header
LB: loop body
LE: loop exit
PB: predicated region body
PF: predicated region fallthrough
CT: control target
= control target key end

     0   :  { %10 = vsyncpa [#allocation3], 0  ;;  %s2835_s0 = inlined_call_operand.vmem [shape: f32[2,16,256], index: 0, kind: input, shape index: {}]   ;;  %s2836_s1 = inlined_call_operand.vmem [shape: f32[11,256], index: 1, kind: input, shape index: {}]   ;;  %s2837_s2 = inlined_call_operand.hbm [shape: f32[16,10], index: 2, kind: input, shape index: {}]   ;;  %s2838_s3 = inlined_call_operand.vmem [shape: f32[4,16,9], index: 3, kind: input, shape index: {}]   ;;  %s2839_s4 = inlined_call_operand.hbm [shape: f32[2,8,8], index: 4, kind: input, shape index: {}]   ;;  %s2840_s5 = inlined_call_operand.hbm [shape: f32[2,8,256], index: 5, kind: output, shape index: {}]  }
   0x1   :  { %12 = vsyncpa [#allocation3 + $0x1], 0 }
   0x2   :  { %13 = vsyncpa [#allocation7], 0 }
   0x3   :  { %15 = vsyncpa [#allocation7 + $0x1], 0 }
   0x4   :  { %16 = vsyncpa [#allocation4], 0 }
   0x5   :  { %18 = vsyncpa [#allocation4 + $0x1], 0  ;;  %s1930_s18 = smov 0   ;;  %s1932_s19 = smov 0  }
   0x6   :  { %s1934_s20 = smov 0   ;;  %s1936_s21 = smov 0  }
   0x7   :  { %s1938_s22 = smov 0   ;;  %s1940_s23 = smov 0  }
   0x8   :  { %s1942_s24 = smov 0   ;;  %s1944_s25 = smov 0  }
   0x9   :  { %s1946_s26 = smov 0   ;;  %s1948_s27 = smov 0  }
   0xa   :  { %s1950_s28 = smov 0  }
   0xb LB: > { %2867 = sst [smem:[#allocation12_spill]] %s1859_s23  ;;  %s1516_s29 = sadd.s32 4294967295, %s1879_s28   ;;  %s1879_s28 = sphi %s1950_s28, %s24_s28   ;;  %s1875_s27 = sphi %s1948_s27, %s2934_s27   ;;  %s1871_s26 = sphi %s1946_s26, %s2933_s26   ;;  %s1867_s25 = sphi %s1944_s25, %s2932_s25   ;;  %s1863_s24 = sphi %s1942_s24, %s2931_s24   ;;  %s1859_s23 = sphi %s1940_s23, %s2930_s23   ;;  %s1855_s22 = sphi %s1938_s22, %s2939_s22   ;;  %s1851_s21 = sphi %s1936_s21, %s2938_s21   ;;  %s1847_s20 = sphi %s1934_s20, %s2937_s20   ;;  %s1843_s19 = sphi %s1932_s19, %s2936_s19   ;;  %s1839_s18 = sphi %s1930_s18, %s2935_s18  }
   0xc   : > { %2868 = sst [smem:[#allocation13_spill]] %s1871_s26  ;;  %s1517_s30 = sadd.s32 4294967294, %s1879_s28  }
   0xd   : > { %2869 = sst [smem:[#allocation14_spill]] %s1875_s27  ;;  %s33_s6 = sadd.s32 1, %s1871_s26 }
   0xe   : > { %s36_s7 = sadd.s32 1, %s1875_s27  ;;  %p34_p0 = scmp.ge.s32.totalorder %s33_s6, 2 }
   0xf   : > { %s92_s8 = sadd.s32 1, %s1859_s23  ;;  %p99_p1 = scmp.ne.s32.totalorder %s1859_s23, %s1855_s22 }
  0x10   : > { %p100_p2 = scmp.eq.s32.totalorder %s1879_s28, 0  ;;  %s2941_s6 = smov (%p34_p0, %s33_s6), 0 }
  0x11   : > { %2870 = sst [smem:[#allocation15_spill]] %s2941_s6  ;;  %s2943_s7 = smov (!%p34_p0, %s36_s7), %s1875_s27 }
  0x12   : > { %s89_s9 = ssub.s32 %s1871_s26, %s2941_s6  ;;  %p1996_p3 = por %p100_p2, %p99_p1 }
  0x13   : > { %p38_p4 = scmp.ge.s32.totalorder %s2943_s7, 2  ;;  %p90_p5 = scmp.eq.s32.totalorder %s89_s9, 0 }
  0x14   : > { %p105_p6 = scmp.ne.s32.totalorder %s1855_s22, %s1851_s21  ;;  %p106_p7 = scmp.eq.s32.totalorder %s1516_s29, 0 }
  0x15   : > { %s2945_s7 = smov (%p38_p4, %s2943_s7), 0  ;;  %s170_s14 = sadd.s32 1, %s1847_s20 }
  0x16   : > { %2872 = sst [smem:[#allocation16_spill]] %s2945_s7  ;;  %p2006_p8 = por %p106_p7, %p105_p6 }
  0x17   : > { %s2004_s11 = scalar_select %p90_p5, %s1859_s23, %s92_s8  }
  0x18   : > { %s167_s13 = ssub.s32 %s1875_s27, %s2945_s7  ;;  %p180_p10 = scmp.ne.s32.totalorder %s1847_s20, %s1843_s19 }
  0x19   : > { %2873 = sst [smem:[#allocation17_spill]] %s2004_s11  ;;  %p168_p9 = scmp.eq.s32.totalorder %s167_s13, 0 }
  0x1a   : > { %p181_p11 = scmp.eq.s32.totalorder %s1516_s29, 3  ;;  %p186_p13 = scmp.ne.s32.totalorder %s1843_s19, %s1839_s18 }
  0x1b   : > { %s2016_s15 = scalar_select %p168_p9, %s1847_s20, %s170_s14  }
  0x1c   : > { %p2018_p12 = por %p181_p11, %p180_p10  ;;  %p187_p0 = scmp.eq.s32.totalorder %s1517_s30, 3 }
  0x1d   : > { %2875 = sst [smem:[#allocation18_spill]] %s2016_s15  ;;  %p1519_p2 = scmp.ge.s32.totalorder %s1879_s28, 4 }
  0x1e   : > { %p2024_p1 = por %p187_p0, %p186_p13  ;;  %s2030_s21 = sand.u32 (!%p1519_p2), 1, %s1859_s23  }
  0x1f   : > { %206 = sbr.rel (%p1519_p2) target bundleno = 48 (0x30), region = 20  ;;  %s1521_s29 = sshll.u32 (!%p1519_p2), %s1871_s26, 3 }
  0x20   : > { %s1520_s8 = sshll.u32 (!%p1519_p2), %s2030_s21, 3  ;;  %s230_s30 = scalar_lea.hbm (!%p1519_p2), %s2837_s2, %s1521_s29 }
  0x21   : > { %s232_s14 = sshll.u32 (!%p1519_p2), %s230_s30, 4  ;;  %s226_s7 = scalar_lea.vmem (!%p1519_p2), [#allocation2], %s1520_s8  ;;  %s233_s14 = int_to_ptr.hbm [resolvable:$true] %s232_s14 }
  0x22   : > { %s234_s6 = sshll.u32 (!%p1519_p2), %s226_s7, 4  ;;  %s223_s27 = scalar_lea.sflag (!%p1519_p2), [#allocation3], %s2030_s21  ;;  %s235_s6 = int_to_ptr.vmem [resolvable:$true] %s234_s6 }
  0x24   : > { %1544 = dma.hbm_to_vmem [thread:$0]  (%p1996_p3), %s233_s14, 128, %s235_s6, %s223_s27  }
  0x25   : > { %240 = sbr.rel (!%p1996_p3) target bundleno = 44 (0x2c), region = 32  ;;  %s1522_s11 = sshll.u32 (%p1996_p3), %s2030_s21, 5 }
  0x26   : > { %s246_s15 = scalar_lea.vmem (%p1996_p3), %s2838_s3, %s1521_s29  ;;  %s244_s9 = scalar_lea.vmem (%p1996_p3), [#allocation5], %s1522_s11 }
  0x27   : > { %v281_v0 = vld [vmem:[%s246_s15] sm:$0xff] (%p1996_p3)  ;;  %v283_v1 = vld [vmem:[%s246_s15 + $0x10] sm:$0xff] (%p1996_p3) }
  0x28   : > { %v285_v2 = vld [vmem:[%s246_s15 + $0x20] sm:$0xff] (%p1996_p3)  ;;  %282 = vst [vmem:[%s244_s9] sm:$0xff] (%p1996_p3), %v281_v0  ;;  %v287_v3 = vld [vmem:[%s246_s15 + $0x30] sm:$0xff] (%p1996_p3) }
  0x29   : > { %284 = vst [vmem:[%s244_s9 + $0x8] sm:$0xff] (%p1996_p3), %v283_v1 }
  0x2a   : > { %286 = vst [vmem:[%s244_s9 + $0x10] sm:$0xff] %v285_v2 }
  0x2b   : > { %288 = vst [vmem:[%s244_s9 + $0x18] sm:$0xff] %v287_v3 }
  0x2c PF: > { %s303_s7 = scalar_lea.hbm %s2839_s4, %s1521_s29  ;;  %s299_s13 = scalar_lea.vmem [#allocation6], %s1520_s8 }
  0x2d   : > { %s307_s30 = sshll.u32 %s299_s13, 4  ;;  %s305_s23 = sshll.u32 %s303_s7, 4  ;;  %s308_s30 = int_to_ptr.vmem [resolvable:$true] %s307_s30  ;;  %s306_s23 = int_to_ptr.hbm [resolvable:$true] %s305_s23 }
  0x2e   : > { %s296_s26 = scalar_lea.sflag [#allocation7], %s2030_s21 }
  0x2f   : > { %1545 = dma.hbm_to_vmem [thread:$0]  (%p1996_p3), %s306_s23, 128, %s308_s30, %s296_s26  }
  0x30 PF: > { %p1526_p4 = scmp.ge.s32.totalorder %s1879_s28, 1  ;;  %p312_p5 = scmp.lt.s32.totalorder %s1879_s28, 5 }
  0x32   : > { %p313_p6 = pnand %p1526_p4, %p312_p5 }
  0x34   : > { %316 = sbr.rel (%p313_p6) target bundleno = 847 (0x34f), region = 74 }
  0x39   : > { %s318_s11 = sand.u32 1, %s1855_s22  }
  0x3a   : > { %s1527_s15 = sshll.u32 %s318_s11, 3  ;;  %s319_s29 = scalar_lea.sflag [#allocation3], %s318_s11 }
  0x3b   : > { %s322_s8 = scalar_lea.vmem [#allocation2], %s1527_s15 }
  0x3c   : > { %1826 = dma.done.wait (%p2006_p8), %s319_s29, 128  }
  0x3d   : > { %1828 = vsyncadd (%p2006_p8), %s319_s29, 4294967168  ;;  %s1528_s10 = sshll.u32 %s318_s11, 5  ;;  %s336_s14 = scalar_lea.sflag [#allocation7], %s318_s11 }
  0x3e   : > { %s2059_s21 = scalar_lea.vmem [#allocation5], %s1528_s10  ;;  %s2061_s9 = scalar_lea.vmem [#allocation6], %s1527_s15 }
  0x3f   : > { %1830 = dma.done.wait (%p2006_p8), %s336_s14, 128  }
  0x40   : > { %1832 = vsyncadd (%p2006_p8), %s336_s14, 4294967168  ;;  %p385_p3 = scmp.lt.s32.totalorder %s1867_s25, 1  ;;  %p387_p7 = scmp.lt.s32.totalorder %s1863_s24, 1  ;;  %v1881_v4 = vmov 7   ;;  %v1882_v5 = vmov 3   ;;  %v1883_v6 = vmov 0   ;;  %v407_v24 = vlaneseq }
  0x41   : > { %1668 = vset.pattern.permute.xlu0 %v1881_v4  ;;  %1664 = vset.pattern.permute.xlu1 %v1882_v5  ;;  %v396_v7 = vld [vmem:[%s322_s8] sm:$0xff]  ;;  %s1884_s15 = smov 127   ;;  %s1885_s29 = smov 1   ;;  %v1886_v10 = vmov 1   ;;  %v1887_v11 = vmov 4   ;;  %v1888_v12 = vmov 5  }
  0x42   : > { %s386_s27 = scalar_select %p385_p3, %s1867_s25, 1  ;;  %1662 = vset.pattern.permute.xlu2 %v1883_v6  ;;  %v1890_v13 = vmov 6   ;;  %v2096_v14 = vld [vmem:[%s2059_s21] sm:$0xff]  ;;  %v1891_v15 = vmov 8   ;;  %v2104_v16 = vld [vmem:[%s2059_s21 + $0x8] sm:$0xff]  ;;  %v1892_v17 = vmov 9  }
  0x43   : > { %s388_s6 = scalar_select %p387_p7, %s1863_s24, 1  ;;  %429 = vperm.xlu2 %1662, %v396_v7   ;;  %v1894_v18 = vmov 2   ;;  %v2110_v19 = vld [vmem:[%s2059_s21 + $0x10] sm:$0xff]  ;;  %v2121_v20 = vld [vmem:[%s2059_s21 + $0x18] sm:$0xff]  ;;  %v2139_v26 = vand.u32 127, %v407_v24 }
  0x44   : > { %s1532_s7 = sshll.u32 %s386_s27, 2  ;;  %s1889_s8 = smov 112   ;;  %v2144_v27 = vld [vmem:[%s2836_s1] sm:$0xff]  ;;  %v2149_v28 = vld [vmem:[%s2836_s1 + $0x8] sm:$0xff] }
  0x45   : > { %s1531_s12 = sshll.u32 %s388_s6, 1  ;;  %s1893_s10 = smov 16   ;;  %2878 = vst [vmem:[#allocation19_spill] sm:$0xff] %v2144_v27  ;;  %vm409_vm0 = vcmp.lt.s32.totalorder %v2139_v26, 1  ;;  %v412_v31 = vperm.slane %v2144_v27, 3  ;;  %v413_v32 = vperm.slane %v2149_v28, 3 }
  0x46   : > { %s391_s13 = sadd.s32 %s1532_s7, %s1531_s12  ;;  %2879 = vst [vmem:[#allocation20_spill] sm:$0xff] %v2149_v28  ;;  %vm420_vm1 = vcmp.lt.s32.totalorder %v2139_v26, 127  ;;  %v423_v45 = vperm.slane %v2144_v27, 4  ;;  %v424_v46 = vperm.slane %v2149_v28, 4  ;;  %vm401_vm2 = vcmp.gt.f32.partialorder %v2144_v27, 0.0  ;;  %s1895_s7 = smov 126  }
  0x47   : > { %s1533_s30 = sshll.u32 %s391_s13, 3  ;;  %vm402_vm3 = vcmp.gt.f32.partialorder %v2149_v28, 0.0  ;;  %v2185_v63 = vsel %vm401_vm2, 1, %v1883_v6  ;;  %vm511_vm4 = vcmp.lt.s32.totalorder %v2139_v26, 112  ;;  %vm498_vm5 = vcmp.lt.s32.totalorder %v2139_v26, 16  ;;  %s1896_s12 = smov 2  }
  0x48   : > { %s393_s11 = scalar_lea.vmem %s2835_s0, %s1533_s30  ;;  %v2188_v0 = vsel %vm402_vm3, 1, %v1883_v6  ;;  %v540_v1 = vperm.slane %v2185_v63, 0  ;;  %vm658_vm10 = vcmp.lt.s32.totalorder %v2139_v26, 126  ;;  %vm623_vm11 = vcmp.lt.s32.totalorder %v2139_v26, 2  ;;  %p1537_p8 = scmp.ne.s32.totalorder %s1863_s24, 0 }
  0x49   : > { %v2077_v8 = vld [vmem:[%s393_s11] sm:$0xff]  ;;  %v2083_v9 = vld [vmem:[%s393_s11 + $0x8] sm:$0xff]  ;;  %v541_v2 = vperm.slane %v2188_v0, 0  ;;  %s1897_s11 = smov 32   ;;  %vm961_vm12 = vcmp.lt.s32.totalorder %v2139_v26, 32  ;;  %vm1004_vm13 = vcmp.lt.s32.totalorder %v2139_v26, 96 }
  0x4a   : > { %416 = vrot.lane.b32.xlu1 %v2077_v8, %s1884_s15  ;;  %403 = vrot.lane.b32.xlu0 %v2077_v8, %s1885_s29  ;;  %vm542_vm6 = vcmp.eq.s32.totalorder %v540_v1, 1 }
  0x4b   : > { %1663 = vset.pattern.permute.xlu2 %v1886_v10  ;;  %vm543_vm7 = vcmp.eq.s32.totalorder %v541_v2, 1 }
  0x4c   : > { %435 = vperm.xlu2 %1663, %v396_v7  }
  0x52   : > { %418 = vrot.lane.b32.xlu1 %v2083_v9, %s1884_s15  ;;  %405 = vrot.lane.b32.xlu0 %v2083_v9, %s1885_s29 }
  0x54   : > { %1665 = vset.pattern.permute.xlu2 %v1887_v11 }
  0x55   : > { %457 = vperm.xlu2 %1665, %v396_v7  }
  0x5a   : > { %451 = vperm.xlu1 %1664, %v396_v7   ;;  %479 = vperm.xlu0 %1668, %v396_v7  }
  0x5d   : > { %1667 = vset.pattern.permute.xlu2 %v1890_v13 }
  0x5e   : > { %473 = vperm.xlu2 %1667, %v396_v7  }
  0x62   : > { %1666 = vset.pattern.permute.xlu1 %v1888_v12  ;;  %528 = vrot.lane.b32.xlu0 %v2083_v9, %s1889_s8 }
  0x63   : > { %465 = vperm.xlu1 %1666, %v396_v7   ;;  %1671 = vset.pattern.permute.xlu0 %v1883_v6 }
  0x66   : > { %526 = vrot.lane.b32.xlu2 %v2077_v8, %s1889_s8 }
  0x67   : > { %1673 = vset.pattern.permute.xlu2 %v1883_v6 }
  0x6a   : > { %679 = vperm.xlu0 %1671, %v2096_v14  }
  0x6b   : > { %1669 = vset.pattern.permute.xlu1 %v1891_v15 }
  0x6c   : > { %487 = vperm.xlu1 %1669, %v396_v7  }
  0x6e   : > { %534 = vrot.lane.b32.xlu2 %v2083_v9, %s1893_s10 }
  0x72   : > { %1675 = vset.pattern.permute.xlu0 %v1886_v10 }
  0x73   : > { %710 = vperm.xlu0 %1675, %v2104_v16  }
  0x74   : > { %1670 = vset.pattern.permute.xlu1 %v1892_v17 }
  0x75   : > { %521 = vperm.xlu1 %1670, %v396_v7  }
  0x76   : > { %689 = vperm.xlu2 %1673, %v2110_v19  }
  0x7b   : > { %1676 = vset.pattern.permute.xlu0 %v1894_v18 }
  0x7c   : > { %443 = vperm.xlu0 %1676, %v396_v7  }
  0x7d   : > { %532 = vrot.lane.b32.xlu1 %v2077_v8, %s1893_s10 }
  0x7e   : > { %1672 = vset.pattern.permute.xlu1 %v1883_v6  ;;  %1674 = vset.pattern.permute.xlu2 %v1886_v10 }
  0x7f   : > { %706 = vperm.xlu2 %1674, %v2096_v14  }
  0x84   : > { %746 = vperm.xlu0 %1676, %v2110_v19  }
  0x85   : > { %684 = vperm.xlu1 %1672, %v2104_v16  }
  0x87   : > { %718 = vperm.xlu2 %1674, %v2121_v20  }
  0x8c   : > { %1682 = vset.pattern.permute.xlu0 %v1882_v5 }
  0x8d   : > { %694 = vperm.xlu1 %1672, %v2121_v20  }
  0x8f   : > { %1679 = vset.pattern.permute.xlu2 %v1894_v18 }
  0x90   : > { %742 = vperm.xlu2 %1679, %v2104_v16  }
  0x95   : > { %1677 = vset.pattern.permute.xlu1 %v1886_v10 }
  0x96   : > { %714 = vperm.xlu1 %1677, %v2110_v19  }
  0x98   : > { %1680 = vset.pattern.permute.xlu2 %v1882_v5 }
  0x99   : > { %770 = vperm.xlu2 %1680, %v2096_v14  }
  0x9d   : > { %v2130_v21 = vpop.permute.xlu2 %429 }
  0x9e   : > { %1678 = vset.pattern.permute.xlu1 %v1894_v18 }
  0x9f   : > { %738 = vperm.xlu1 %1678, %v2096_v14  }
  0xa1   : > { %778 = vperm.xlu2 %1680, %v2110_v19  }
  0xa6   : > { %v2134_v25 = vpop.permute.xlu2 %435 }
  0xa7   : > { %750 = vperm.xlu1 %1678, %v2121_v20  }
  0xa9   : > { %1684 = vset.pattern.permute.xlu2 %v1887_v11 }
  0xaf   : > { %1681 = vset.pattern.permute.xlu1 %v1882_v5  ;;  %v458_v35 = vpop.permute.xlu2 %457 }
  0xb0   : > { %774 = vperm.xlu1 %1681, %v2104_v16   ;;  %v460_v38 = vmul.f32 %v458_v35, %v2077_v8  ;;  %v461_v39 = vmul.f32 %v458_v35, %v2083_v9 }
  0xb8   : > { %1683 = vset.pattern.permute.xlu1 %v1887_v11  ;;  %v474_v57 = vpop.permute.xlu2 %473 }
  0xbc   : > { %v417_v22 = vpop.permute.xlu1 %416  ;;  %v404_v23 = vpop.permute.xlu0 %403 }
  0xc0   : > { %v527_v60 = vpop.permute.xlu2 %526 }
  0xc4   : > { %v419_v29 = vpop.permute.xlu1 %418  ;;  %v406_v30 = vpop.permute.xlu0 %405 }
  0xc5   : > { %v410_v33 = vsel %vm409_vm0, %v404_v23, %v406_v30  ;;  %v411_v34 = vsel %vm409_vm0, %v406_v30, %v404_v23  ;;  %v421_v47 = vsel %vm420_vm1, %v417_v22, %v419_v29  ;;  %v422_v48 = vsel %vm420_vm1, %v419_v29, %v417_v22 }
  0xc6   : > { %v2159_v36 = vmul.f32 %v412_v31, %v411_v34  ;;  %v2161_v37 = vmul.f32 %v413_v32, %v410_v33  ;;  %v425_v50 = vmul.f32 %v423_v45, %v421_v47  ;;  %v426_v51 = vmul.f32 %v424_v46, %v422_v48 }
  0xc7   : > { %v2847_v29 = vperm.slane %v2144_v27, 0  ;;  %v438_v33 = vmul.f32 %v2134_v25, %v2077_v8 }
  0xc8   : > { %v535_v3 = vpop.permute.xlu2 %534  ;;  %v432_v34 = vmul.f32 %v2130_v21, %v2159_v36  ;;  %v476_v46 = vmul.f32 %v474_v57, %v2159_v36  ;;  %v477_v48 = vmul.f32 %v474_v57, %v2161_v37 }
  0xcc   : > { %v452_v40 = vpop.permute.xlu1 %451  ;;  %v480_v49 = vpop.permute.xlu0 %479 }
  0xcd   : > { %v454_v41 = vmul.f32 %v452_v40, %v2159_v36  ;;  %v455_v42 = vmul.f32 %v452_v40, %v2161_v37  ;;  %v440_v40 = vadd.f32 %v438_v33, %v432_v34  ;;  %v482_v45 = vmul.f32 %v480_v49, %v2077_v8 }
  0xce   : > { %v483_v47 = vmul.f32 %v480_v49, %v2083_v9 }
  0xcf   : > { %v462_v43 = vadd.f32 %v460_v38, %v454_v41  ;;  %v463_v44 = vadd.f32 %v461_v39, %v455_v42  ;;  %v2846_v38 = vperm.slane %v2149_v28, 0 }
  0xd4   : > { %v529_v58 = vpop.permute.xlu0 %528 }
  0xd5   : > { %v466_v52 = vpop.permute.xlu1 %465  ;;  %v530_v7 = vsel %vm511_vm4, %v527_v60, %v529_v58  ;;  %v531_v10 = vsel %vm511_vm4, %v529_v58, %v527_v60 }
  0xd6   : > { %v468_v53 = vmul.f32 %v466_v52, %v425_v50  ;;  %v469_v54 = vmul.f32 %v466_v52, %v426_v51 }
  0xd8   : > { %v2174_v55 = vadd.f32 %v468_v53, %v462_v43  ;;  %v2176_v56 = vadd.f32 %v469_v54, %v463_v44  ;;  %v439_v43 = vmul.f32 %v2134_v25, %v2083_v9  ;;  %v433_v44 = vmul.f32 %v2130_v21, %v2161_v37 }
  0xd9   : > { %v484_v21 = vadd.f32 %v482_v45, %v476_v46 }
  0xda   : > { %v441_v54 = vadd.f32 %v439_v43, %v433_v44  ;;  %v2345_v43 = vperm.slane %v2144_v27, 1 }
  0xdc   : > { %v2180_v61 = vpop.permute.xlu0 %679  ;;  %2888 = vst [vmem:[#allocation25_spill] sm:$0xff] %v2345_v43 }
  0xde   : > { %v488_v59 = vpop.permute.xlu1 %487 }
  0xdf   : > { %v490_v25 = vmul.f32 %v488_v59, %v425_v50  ;;  %v491_v53 = vmul.f32 %v488_v59, %v426_v51 }
  0xe1   : > { %v492_v58 = vadd.f32 %v490_v25, %v484_v21 }
  0xe5   : > { %v2202_v17 = vpop.permute.xlu0 %710 }
  0xe7   : > { %v2182_v62 = vpop.permute.xlu1 %521 }
  0xe8   : > { %2880 = vst [vmem:[#allocation21_spill] sm:$0xff] %v2182_v62 }
  0xee   : > { %v444_v32 = vpop.permute.xlu0 %443 }
  0xef   : > { %v533_v5 = vpop.permute.xlu1 %532  ;;  %v446_v35 = vmul.f32 %v444_v32, %v425_v50  ;;  %v447_v52 = vmul.f32 %v444_v32, %v426_v51 }
  0xf0   : > { %v536_v6 = vsel %vm498_vm5, %v533_v5, %v535_v3  ;;  %v537_v11 = vsel %vm498_vm5, %v535_v3, %v533_v5 }
  0xf1   : > { %v544_v18 = vsel %vm542_vm6, %v530_v7, %v537_v11  ;;  %v545_v22 = vsel %vm543_vm7, %v531_v10, %v536_v6  ;;  %v448_v41 = vadd.f32 %v446_v35, %v440_v40  ;;  %v449_v36 = vadd.f32 %v447_v52, %v441_v54 }
  0xf2   : > { %v2205_v23 = vadd.f32 %v544_v18, %v2077_v8  ;;  %v2208_v24 = vadd.f32 %v545_v22, %v2083_v9  ;;  %v548_v30 = vsub.f32 %v2077_v8, %v544_v18  ;;  %v549_v39 = vsub.f32 %v2083_v9, %v545_v22  ;;  %v2254_v9 = vpop.permute.xlu2 %689 }
  0xf3   : > { %v485_v8 = vadd.f32 %v483_v47, %v477_v48  ;;  %v578_v18 = vperm.slane %v2185_v63, 1  ;;  %v579_v22 = vperm.slane %v2188_v0, 1 }
  0xf4   : > { %558 = vrot.lane.b32.xlu2 %v2208_v24, %s1884_s15  ;;  %566 = vrot.lane.b32.xlu1 %v2205_v23, %s1885_s29  ;;  %v2220_v31 = vmul.f32 %v2847_v29, %v548_v30  ;;  %v2236_v42 = vmul.f32 %v2846_v38, %v549_v39  ;;  %v2510_v29 = vperm.slane %v2144_v27, 7 }
  0xf5   : > { %554 = vrot.lane.b32.xlu0 %v2205_v23, %s1884_s15  ;;  %v493_v60 = vadd.f32 %v491_v53, %v485_v8  ;;  %vm2314_vm8 = vcmp.eq.s32.totalorder %v578_v18, 1  ;;  %vm2318_vm9 = vcmp.eq.s32.totalorder %v579_v22, 1  ;;  %v502_v18 = vperm.slane %v2149_v28, 5 }
  0xf6   : > { %v2310_v10 = vpop.permute.xlu0 %746 }
  0xf7   : > { %v2275_v50 = vpop.permute.xlu1 %684 }
  0xfa   : > { %v2261_v37 = vpop.permute.xlu2 %706 }
  0xfc   : > { %568 = vrot.lane.b32.xlu2 %v2220_v31, %s1885_s29  ;;  %556 = vrot.lane.b32.xlu1 %v2220_v31, %s1884_s15 }
  0xfd   : > { %570 = vrot.lane.b32.xlu0 %v2208_v24, %s1885_s29 }
  0xff   : > { %v2285_v51 = vpop.permute.xlu1 %694 }
 0x100   : > { %2882 = vst [vmem:[#allocation23_spill] sm:$0xff] %v2285_v51 }
 0x102   : > { %v2270_v49 = vpop.permute.xlu2 %718 }
 0x103   : > { %2881 = vst [vmem:[#allocation22_spill] sm:$0xff] %v2270_v49 }
 0x104   : > { %572 = vrot.lane.b32.xlu1 %v2236_v42, %s1885_s29  ;;  %494 = vrot.lane.b32.xlu2 %v448_v41, %s1893_s10  ;;  %s382_s29 = sand.u32 1, %s1843_s19  }
 0x105   : > { %560 = vrot.lane.b32.xlu0 %v2236_v42, %s1884_s15  ;;  %s1898_s15 = smov 96  }
 0x108   : > { %v2294_v59 = vpop.permute.xlu1 %714 }
 0x10c   : > { %496 = vrot.lane.b32.xlu1 %v449_v36, %s1893_s10  ;;  %507 = vrot.lane.b32.xlu2 %v492_v58, %s1889_s8 }
 0x10d   : > { %509 = vrot.lane.b32.xlu0 %v493_v60, %s1889_s8  ;;  %s2696_s8 = sshll.u32 %s382_s29, 4 }
 0x10e   : > { %s2771_s10 = scalar_lea.vmem [#allocation8], %s2696_s8 }
 0x111   : > { %v2301_v1 = vpop.permute.xlu1 %738 }
 0x114   : > { %794 = vperm.xlu1 %1683, %v2096_v14   ;;  %798 = vperm.xlu2 %1684, %v2104_v16  }
 0x115   : > { %782 = vperm.xlu0 %1682, %v2121_v20  }
 0x11c   : > { %802 = vperm.xlu1 %1683, %v2110_v19   ;;  %806 = vperm.xlu2 %1684, %v2121_v20  }
 0x11d   : > { %1685 = vset.pattern.permute.xlu0 %v1888_v12 }
 0x11e   : > { %826 = vperm.xlu0 %1685, %v2096_v14  }
 0x124   : > { %1686 = vset.pattern.permute.xlu1 %v1888_v12  ;;  %1687 = vset.pattern.permute.xlu2 %v1888_v12  ;;  %v2280_v12 = vpop.permute.xlu2 %742 }
 0x125   : > { %830 = vperm.xlu1 %1686, %v2104_v16   ;;  %834 = vperm.xlu2 %1687, %v2110_v19  }
 0x126   : > { %1689 = vset.pattern.permute.xlu0 %v1890_v13 }
 0x127   : > { %862 = vperm.xlu0 %1689, %v2104_v16  }
 0x12c   : > { %v2288_v57 = vpop.permute.xlu2 %770 }
 0x12d   : > { %838 = vperm.xlu1 %1686, %v2121_v20   ;;  %1688 = vset.pattern.permute.xlu2 %v1890_v13 }
 0x12e   : > { %858 = vperm.xlu2 %1688, %v2096_v14  }
 0x12f   : > { %1693 = vset.pattern.permute.xlu0 %v1881_v4 }
 0x130   : > { %890 = vperm.xlu0 %1693, %v2110_v19  }
 0x135   : > { %1690 = vset.pattern.permute.xlu1 %v1890_v13  ;;  %v2296_v13 = vpop.permute.xlu2 %778 }
 0x136   : > { %866 = vperm.xlu1 %1690, %v2110_v19   ;;  %870 = vperm.xlu2 %1688, %v2121_v20  }
 0x138   : > { %1696 = vset.pattern.permute.xlu0 %v1891_v15 }
 0x13e   : > { %1691 = vset.pattern.permute.xlu1 %v1881_v4  ;;  %1692 = vset.pattern.permute.xlu2 %v1881_v4  ;;  %v2306_v4 = vpop.permute.xlu1 %750 }
 0x13f   : > { %886 = vperm.xlu1 %1691, %v2104_v16   ;;  %882 = vperm.xlu2 %1692, %v2096_v14   ;;  %2883 = vst [vmem:[#allocation24_spill] sm:$0xff] %v2306_v4 }
 0x146   : > { %v2308_v5 = vpop.permute.xlu1 %774 }
 0x147   : > { %894 = vperm.xlu2 %1692, %v2121_v20   ;;  %1694 = vset.pattern.permute.xlu1 %v1891_v15 }
 0x148   : > { %918 = vperm.xlu1 %1694, %v2104_v16  }
 0x14e   : > { %v559_v2 = vpop.permute.xlu2 %558 }
 0x14f   : > { %1695 = vset.pattern.permute.xlu2 %v1891_v15 }
 0x150   : > { %914 = vperm.xlu1 %1694, %v2096_v14   ;;  %922 = vperm.xlu2 %1695, %v2110_v19   ;;  %v514_v19 = vperm.slane %v2144_v27, 6 }
 0x156   : > { %v569_v3 = vpop.permute.xlu2 %568 }
 0x15e   : > { %v495_v7 = vpop.permute.xlu2 %494 }
 0x166   : > { %v567_v6 = vpop.permute.xlu1 %566  ;;  %v508_v11 = vpop.permute.xlu2 %507 }
 0x167   : > { %v555_v16 = vpop.permute.xlu0 %554 }
 0x168   : > { %v562_v33 = vsel %vm420_vm1, %v555_v16, %v559_v2  ;;  %v564_v34 = vsel %vm420_vm1, %v559_v2, %v555_v16  ;;  %v501_v16 = vperm.slane %v2144_v27, 5 }
 0x16e   : > { %v557_v15 = vpop.permute.xlu1 %556  ;;  %v799_v30 = vpop.permute.xlu2 %798 }
 0x16f   : > { %v571_v32 = vpop.permute.xlu0 %570 }
 0x170   : > { %v574_v63 = vsel %vm409_vm0, %v567_v6, %v571_v32  ;;  %v576_v0 = vsel %vm409_vm0, %v571_v32, %v567_v6  ;;  %v515_v32 = vperm.slane %v2149_v28, 6 }
 0x171   : > { %v582_v35 = vsel %vm2314_vm8, %v562_v33, %v576_v0  ;;  %v583_v39 = vsel %vm2318_vm9, %v564_v34, %v574_v63 }
 0x172   : > { %v2335_v40 = vadd.f32 %v582_v35, %v2205_v23  ;;  %v2338_v41 = vadd.f32 %v583_v39, %v2208_v24  ;;  %v590_v44 = vsub.f32 %v2205_v23, %v582_v35  ;;  %v2359_v23 = vperm.slane %v2149_v28, 1 }
 0x173   : > { %v591_v33 = vsub.f32 %v2208_v24, %v583_v39 }
 0x174   : > { %642 = vrot.lane.b32.xlu1 %v2335_v40, %s1895_s7  ;;  %615 = vrot.lane.b32.xlu0 %v2338_v41, %s1896_s12  ;;  %2889 = vst [vmem:[#allocation26_spill] sm:$0xff] %v2359_v23  ;;  %v2362_v21 = vmul.f32 %v2345_v43, %v590_v44 }
 0x175   : > { %607 = vrot.lane.b32.xlu2 %v2335_v40, %s1896_s12 }
 0x176   : > { %v573_v45 = vpop.permute.xlu1 %572  ;;  %v807_v46 = vpop.permute.xlu2 %806 }
 0x177   : > { %v575_v47 = vsel %vm409_vm0, %v569_v3, %v573_v45  ;;  %v577_v48 = vsel %vm409_vm0, %v573_v45, %v569_v3  ;;  %v561_v25 = vpop.permute.xlu0 %560 }
 0x178   : > { %v563_v52 = vsel %vm420_vm1, %v557_v15, %v561_v25  ;;  %v565_v53 = vsel %vm420_vm1, %v561_v25, %v557_v15  ;;  %v2418_v25 = vmul.f32 %v2359_v23, %v591_v33 }
 0x179   : > { %v584_v54 = vsel %vm2314_vm8, %v563_v52, %v577_v48  ;;  %v585_v8 = vsel %vm2318_vm9, %v565_v53, %v575_v47 }
 0x17a   : > { %v2369_v58 = vadd.f32 %v584_v54, %v2220_v31  ;;  %v2372_v36 = vadd.f32 %v585_v8, %v2236_v42  ;;  %v592_v60 = vsub.f32 %v2220_v31, %v584_v54  ;;  %v593_v2 = vsub.f32 %v2236_v42, %v585_v8 }
 0x17c   : > { %v2377_v3 = vmul.f32 %v2345_v43, %v592_v60  ;;  %v2380_v6 = vmul.f32 %v2359_v23, %v593_v2  ;;  %611 = vrot.lane.b32.xlu1 %v2362_v21, %s1896_s12  ;;  %609 = vrot.lane.b32.xlu0 %v2369_v58, %s1896_s12  ;;  %v2391_v31 = vmul.f32 %v799_v30, %v2369_v58 }
 0x17d   : > { %650 = vrot.lane.b32.xlu2 %v2338_v41, %s1895_s7  ;;  %v2394_v42 = vmul.f32 %v799_v30, %v2372_v36 }
 0x17e   : > { %2890 = vst [vmem:[#allocation27_spill] sm:$0xff] %v2377_v3  ;;  %v2397_v22 = vmul.f32 %v807_v46, %v2377_v3  ;;  %v2400_v15 = vmul.f32 %v807_v46, %v2380_v6  ;;  %v497_v14 = vpop.permute.xlu1 %496 }
 0x17f   : > { %2891 = vst [vmem:[#allocation28_spill] sm:$0xff] %v2380_v6  ;;  %v499_v34 = vsel %vm498_vm5, %v495_v7, %v497_v14  ;;  %v500_v30 = vsel %vm498_vm5, %v497_v14, %v495_v7  ;;  %v510_v63 = vpop.permute.xlu0 %509  ;;  %v2409_v0 = vpop.permute.xlu2 %834 }
 0x180   : > { %2892 = vst [vmem:[#allocation29_spill] sm:$0xff] %v2397_v22  ;;  %v503_v35 = vmul.f32 %v501_v16, %v500_v30  ;;  %v504_v44 = vmul.f32 %v502_v18, %v499_v34  ;;  %v512_v45 = vsel %vm511_vm4, %v508_v11, %v510_v63  ;;  %v513_v46 = vsel %vm511_vm4, %v510_v63, %v508_v11 }
 0x181   : > { %2893 = vst [vmem:[#allocation30_spill] sm:$0xff] %v2400_v15  ;;  %v516_v39 = vmul.f32 %v514_v19, %v512_v45  ;;  %v517_v48 = vmul.f32 %v515_v32, %v513_v46 }
 0x182   : > { %v505_v47 = vadd.f32 %v503_v35, %v2174_v55  ;;  %v506_v24 = vadd.f32 %v504_v44, %v2176_v56 }
 0x184   : > { %v2420_v7 = vadd.f32 %v516_v39, %v505_v47  ;;  %v2422_v52 = vadd.f32 %v517_v48, %v506_v24  ;;  %617 = vrot.lane.b32.xlu1 %v2372_v36, %s1896_s12  ;;  %646 = vrot.lane.b32.xlu0 %v2362_v21, %s1895_s7 }
 0x185   : > { %619 = vrot.lane.b32.xlu2 %v2418_v25, %s1896_s12 }
 0x186   : > { %2894 = vst [vmem:[#allocation31_spill] sm:$0xff] %v2420_v7  ;;  %v795_v55 = vpop.permute.xlu1 %794 }
 0x187   : > { %2895 = vst [vmem:[#allocation32_spill] sm:$0xff] %v2422_v52  ;;  %v2431_v56 = vmul.f32 %v795_v55, %v2335_v40  ;;  %v2434_v11 = vmul.f32 %v795_v55, %v2338_v41  ;;  %v2494_v55 = vld [vmem:[%s2836_s1 + $0x10] sm:$0x7]  ;;  %v2513_v52 = vperm.slane %v2149_v28, 7 }
 0x188   : > { %v2436_v53 = vpop.permute.xlu2 %858  ;;  %2902 = vst [vmem:[#allocation39_spill] sm:$0xff] %v2494_v55 }
 0x18c   : > { %654 = vrot.lane.b32.xlu1 %v2418_v25, %s1895_s7  ;;  %652 = vrot.lane.b32.xlu0 %v2372_v36, %s1895_s7 }
 0x18d   : > { %644 = vrot.lane.b32.xlu2 %v2369_v58, %s1895_s7 }
 0x18e   : > { %v803_v54 = vpop.permute.xlu1 %802 }
 0x18f   : > { %v2445_v8 = vmul.f32 %v803_v54, %v2362_v21  ;;  %v2448_v60 = vmul.f32 %v803_v54, %v2418_v25  ;;  %v2499_v54 = vld [vmem:[%s2836_s1 + $0x18] sm:$0x7] }
 0x190   : > { %v2450_v2 = vpop.permute.xlu2 %870  ;;  %2903 = vst [vmem:[#allocation40_spill] sm:$0xff] %v2499_v54  ;;  %v2506_v38 = vperm.slane %v2499_v54, 0 }
 0x191   : > { %2896 = vst [vmem:[#allocation33_spill] sm:$0xff] %v2450_v2 }
 0x194   : > { %648 = vrot.lane.b32.xlu1 %v2377_v3, %s1895_s7  ;;  %621 = vrot.lane.b32.xlu0 %v2380_v6, %s1896_s12 }
 0x195   : > { %613 = vrot.lane.b32.xlu2 %v2377_v3, %s1896_s12 }
 0x197   : > { %v2458_v16 = vpop.permute.xlu1 %830 }
 0x199   : > { %v2460_v18 = vpop.permute.xlu2 %882 }
 0x19c   : > { %926 = vperm.xlu0 %1696, %v2121_v20   ;;  %v2481_v20 = vpop.permute.xlu0 %782 }
 0x19d   : > { %656 = vrot.lane.b32.xlu2 %v2380_v6, %s1895_s7  ;;  %2901 = vst [vmem:[#allocation38_spill] sm:$0xff] %v2481_v20 }
 0x19f   : > { %v2465_v14 = vpop.permute.xlu1 %838 }
 0x1a0   : > { %2897 = vst [vmem:[#allocation34_spill] sm:$0xff] %v2465_v14 }
 0x1a1   : > { %v895_v19 = vpop.permute.xlu2 %894 }
 0x1a2   : > { %v2468_v32 = vmul.f32 %v895_v19, %v2377_v3  ;;  %v2471_v33 = vmul.f32 %v895_v19, %v2380_v6  ;;  %v2503_v19 = vperm.slane %v2494_v55, 0 }
 0x1a4   : > { %2898 = vst [vmem:[#allocation35_spill] sm:$0xff] %v2468_v32  ;;  %v827_v44 = vpop.permute.xlu0 %826 }
 0x1a5   : > { %2899 = vst [vmem:[#allocation36_spill] sm:$0xff] %v2471_v33 }
 0x1a8   : > { %v2473_v34 = vpop.permute.xlu1 %866 }
 0x1aa   : > { %v2483_v35 = vpop.permute.xlu2 %922 }
 0x1ac   : > { %v2485_v46 = vpop.permute.xlu0 %862 }
 0x1b1   : > { %v2475_v30 = vpop.permute.xlu1 %886 }
 0x1b2   : > { %v2479_v63 = vmul.f32 %v2475_v30, %v2369_v58 }
 0x1b4   : > { %2900 = vst [vmem:[#allocation37_spill] sm:$0xff] %v2479_v63  ;;  %v2489_v39 = vpop.permute.xlu0 %890 }
 0x1ba   : > { %v2487_v47 = vpop.permute.xlu1 %918 }
 0x1c2   : > { %v915_v48 = vpop.permute.xlu1 %914 }
 0x1cf   : > { %v608_v45 = vpop.permute.xlu2 %607 }
 0x1d7   : > { %v651_v24 = vpop.permute.xlu2 %650 }
 0x1df   : > { %v620_v23 = vpop.permute.xlu2 %619 }
 0x1e6   : > { %v643_v62 = vpop.permute.xlu1 %642  ;;  %v616_v7 = vpop.permute.xlu0 %615 }
 0x1e7   : > { %v659_v43 = vsel %vm658_vm10, %v643_v62, %v651_v24  ;;  %v663_v55 = vsel %vm658_vm10, %v651_v24, %v643_v62  ;;  %v624_v54 = vsel %vm623_vm11, %v608_v45, %v616_v7  ;;  %v628_v32 = vsel %vm623_vm11, %v616_v7, %v608_v45 }
 0x1e8   : > { %v669_v27 = vmul.f32 %v2503_v19, %v659_v43  ;;  %v670_v28 = vmul.f32 %v2506_v38, %v663_v55  ;;  %v634_v33 = vmul.f32 %v2510_v29, %v628_v32  ;;  %v635_v2 = vmul.f32 %v2513_v52, %v624_v54 }
 0x1e9   : > { %v722_v62 = vmul.f32 %v2261_v37, %v2338_v41  ;;  %v721_v24 = vmul.f32 %v2261_v37, %v2335_v40  ;;  %v898_v7 = vmul.f32 %v2460_v18, %v2338_v41 }
 0x1ea   : > { %v697_v4 = vmul.f32 %v2180_v61, %v634_v33  ;;  %v698_v3 = vmul.f32 %v2180_v61, %v635_v2  ;;  %v785_v43 = vmul.f32 %v2288_v57, %v634_v33  ;;  %v786_v45 = vmul.f32 %v2288_v57, %v635_v2 }
 0x1eb   : > { %v874_v32 = vmul.f32 %v2436_v53, %v635_v2  ;;  %v841_v55 = vmul.f32 %v827_v44, %v669_v27  ;;  %v754_v49 = vmul.f32 %v2301_v1, %v670_v28  ;;  %v842_v6 = vmul.f32 %v827_v44, %v670_v28 }
 0x1ec   : > { %v730_v54 = vadd.f32 %v722_v62, %v698_v3  ;;  %v729_v61 = vadd.f32 %v721_v24, %v697_v4  ;;  %v930_v63 = vmul.f32 %v915_v48, %v670_v28  ;;  %v753_v15 = vmul.f32 %v2301_v1, %v669_v27 }
 0x1ed   : > { %v906_v51 = vadd.f32 %v898_v7, %v874_v32  ;;  %v873_v37 = vmul.f32 %v2436_v53, %v634_v33  ;;  %v817_v20 = vadd.f32 %v2431_v56, %v785_v43  ;;  %v818_v57 = vadd.f32 %v2434_v11, %v786_v45  ;;  %v645_v11 = vpop.permute.xlu2 %644 }
 0x1ee   : > { %v612_v22 = vpop.permute.xlu1 %611  ;;  %v610_v41 = vpop.permute.xlu0 %609  ;;  %v762_v14 = vadd.f32 %v754_v49, %v730_v54  ;;  %v761_v44 = vadd.f32 %v753_v15, %v729_v61  ;;  %v897_v28 = vmul.f32 %v2460_v18, %v2335_v40  ;;  %v929_v15 = vmul.f32 %v915_v48, %v669_v27 }
 0x1ef   : > { %v626_v3 = vsel %vm623_vm11, %v612_v22, %v620_v23  ;;  %v630_v4 = vsel %vm623_vm11, %v620_v23, %v612_v22  ;;  %v938_v2 = vadd.f32 %v930_v63, %v906_v51  ;;  %v2554_v56 = vadd.f32 %v841_v55, %v817_v20 }
 0x1f0   : > { %v2550_v1 = vmul.f32 %v2510_v29, %v630_v4  ;;  %v639_v49 = vmul.f32 %v2513_v52, %v626_v3  ;;  %953 = vrot.lane.b32.xlu0 %v762_v14, %s1897_s11  ;;  %945 = vrot.lane.b32.xlu1 %v761_v44, %s1897_s11  ;;  %v2558_v51 = vadd.f32 %v842_v6, %v818_v57 }
 0x1f1   : > { %996 = vrot.lane.b32.xlu2 %v938_v2, %s1898_s15  ;;  %v905_v22 = vadd.f32 %v897_v28, %v873_v37  ;;  %v724_v7 = vmul.f32 %v2202_v17, %v2372_v36 }
 0x1f2   : > { %v789_v40 = vmul.f32 %v2296_v13, %v2550_v1  ;;  %v790_v23 = vmul.f32 %v2296_v13, %v639_v49 }
 0x1f3   : > { %v937_v63 = vadd.f32 %v929_v15, %v905_v22 }
 0x1f4   : > { %v2564_v53 = vadd.f32 %v2445_v8, %v789_v40  ;;  %v2567_v18 = vadd.f32 %v2448_v60, %v790_v23  ;;  %v902_v40 = vmul.f32 %v2489_v39, %v2418_v25 }
 0x1f5   : > { %v614_v60 = vpop.permute.xlu2 %613 }
 0x1f6   : > { %v618_v14 = vpop.permute.xlu1 %617  ;;  %v647_v33 = vpop.permute.xlu0 %646 }
 0x1f7   : > { %v625_v6 = vsel %vm623_vm11, %v610_v41, %v618_v14  ;;  %v629_v20 = vsel %vm623_vm11, %v618_v14, %v610_v41 }
 0x1f8   : > { %v2574_v62 = vmul.f32 %v2510_v29, %v629_v20  ;;  %v637_v27 = vmul.f32 %v2513_v52, %v625_v6  ;;  %988 = vrot.lane.b32.xlu0 %v937_v63, %s1898_s15  ;;  %v701_v6 = vmul.f32 %v2254_v9, %v2550_v1  ;;  %v878_v20 = vmul.f32 %v2473_v34, %v639_v49 }
 0x1fa   : > { %v787_v13 = vmul.f32 %v2308_v5, %v2574_v62  ;;  %v788_v8 = vmul.f32 %v2308_v5, %v637_v27  ;;  %v699_v43 = vmul.f32 %v2275_v50, %v2574_v62  ;;  %v700_v45 = vmul.f32 %v2275_v50, %v637_v27 }
 0x1fb   : > { %v876_v32 = vmul.f32 %v2485_v46, %v637_v27  ;;  %v723_v5 = vmul.f32 %v2202_v17, %v2369_v58  ;;  %v900_v58 = vmul.f32 %v2475_v30, %v2372_v36 }
 0x1fc   : > { %v819_v48 = vadd.f32 %v2391_v31, %v787_v13  ;;  %v820_v24 = vadd.f32 %v2394_v42, %v788_v8  ;;  %v732_v3 = vadd.f32 %v724_v7, %v700_v45 }
 0x1fd   : > { %v731_v4 = vadd.f32 %v723_v5, %v699_v43  ;;  %v908_v2 = vadd.f32 %v900_v58, %v876_v32  ;;  %v657_v36 = vpop.permute.xlu2 %656 }
 0x1fe   : > { %v655_v55 = vpop.permute.xlu1 %654  ;;  %v653_v54 = vpop.permute.xlu0 %652 }
 0x1ff   : > { %v661_v31 = vsel %vm658_vm10, %v647_v33, %v655_v55  ;;  %v665_v42 = vsel %vm658_vm10, %v655_v55, %v647_v33  ;;  %v660_v61 = vsel %vm658_vm10, %v645_v11, %v653_v54  ;;  %v664_v37 = vsel %vm658_vm10, %v653_v54, %v645_v11 }
 0x200   : > { %v2600_v50 = vmul.f32 %v2503_v19, %v661_v31  ;;  %v674_v41 = vmul.f32 %v2506_v38, %v665_v42  ;;  %v671_v57 = vmul.f32 %v2503_v19, %v660_v61  ;;  %v672_v17 = vmul.f32 %v2506_v38, %v664_v37  ;;  %v2905_v37 = vld [vmem:[#allocation34_spill] sm:$0xff] }
 0x202   : > { %v932_v44 = vmul.f32 %v2487_v47, %v672_v17  ;;  %v756_v28 = vmul.f32 %v2280_v12, %v672_v17  ;;  %v755_v11 = vmul.f32 %v2280_v12, %v671_v57  ;;  %v845_v23 = vmul.f32 %v2409_v0, %v2600_v50 }
 0x203   : > { %v846_v22 = vmul.f32 %v2409_v0, %v674_v41  ;;  %v843_v15 = vmul.f32 %v2458_v16, %v671_v57  ;;  %v844_v30 = vmul.f32 %v2458_v16, %v672_v17  ;;  %v702_v12 = vmul.f32 %v2254_v9, %v639_v49 }
 0x204   : > { %v940_v14 = vadd.f32 %v932_v44, %v908_v2  ;;  %v764_v33 = vadd.f32 %v756_v28, %v732_v3  ;;  %v763_v63 = vadd.f32 %v755_v11, %v731_v4  ;;  %v934_v8 = vmul.f32 %v2483_v35, %v674_v41  ;;  %v2906_v3 = vld [vmem:[#allocation29_spill] sm:$0xff]  ;;  %v2907_v2 = vld [vmem:[#allocation30_spill] sm:$0xff] }
 0x205   : > { %v2637_v55 = vadd.f32 %v843_v15, %v819_v48  ;;  %v2639_v54 = vadd.f32 %v844_v30, %v820_v24  ;;  %v2645_v5 = vadd.f32 %v846_v22, %v2567_v18  ;;  %v2904_v48 = vld [vmem:[#allocation38_spill] sm:$0xff]  ;;  %v933_v22 = vmul.f32 %v2483_v35, %v2600_v50  ;;  %v2908_v15 = vld [vmem:[#allocation37_spill] sm:$0xff] }
 0x206   : > { %v649_v27 = vpop.permute.xlu1 %648  ;;  %v622_v13 = vpop.permute.xlu0 %621  ;;  %998 = vrot.lane.b32.xlu0 %v940_v14, %s1898_s15  ;;  %955 = vrot.lane.b32.xlu2 %v764_v33, %s1897_s11  ;;  %v2909_v14 = vld [vmem:[#allocation23_spill] sm:$0xff] }
 0x207   : > { %v662_v0 = vsel %vm658_vm10, %v649_v27, %v657_v36  ;;  %v666_v16 = vsel %vm658_vm10, %v657_v36, %v649_v27  ;;  %v627_v7 = vsel %vm623_vm11, %v614_v60, %v622_v13  ;;  %v631_v43 = vsel %vm623_vm11, %v622_v13, %v614_v60  ;;  %947 = vrot.lane.b32.xlu1 %v763_v63, %s1897_s11 }
 0x208   : > { %v675_v9 = vmul.f32 %v2503_v19, %v662_v0  ;;  %v676_v49 = vmul.f32 %v2506_v38, %v666_v16  ;;  %v640_v45 = vmul.f32 %v2510_v29, %v631_v43  ;;  %v641_v32 = vmul.f32 %v2513_v52, %v627_v7 }
 0x209   : > { %v2642_v60 = vadd.f32 %v845_v23, %v2564_v53  ;;  %v910_v19 = vadd.f32 %v902_v40, %v878_v20  ;;  %v725_v29 = vmul.f32 %v2294_v59, %v2362_v21  ;;  %v757_v38 = vmul.f32 %v2310_v10, %v2600_v50 }
 0x20a   : > { %v726_v52 = vmul.f32 %v2294_v59, %v2418_v25  ;;  %v791_v31 = vmul.f32 %v2904_v48, %v640_v45  ;;  %v792_v24 = vmul.f32 %v2904_v48, %v641_v32  ;;  %v758_v53 = vmul.f32 %v2310_v10, %v674_v41 }
 0x20b   : > { %v942_v42 = vadd.f32 %v934_v8, %v910_v19  ;;  %v733_v61 = vadd.f32 %v725_v29, %v701_v6  ;;  %v847_v17 = vmul.f32 %v2905_v37, %v675_v9  ;;  %v848_v58 = vmul.f32 %v2905_v37, %v676_v49  ;;  %v2914_v8 = vld [vmem:[#allocation33_spill] sm:$0xff]  ;;  %v2915_v19 = vld [vmem:[#allocation36_spill] sm:$0xff] }
 0x20c   : > { %v734_v18 = vadd.f32 %v726_v52, %v702_v12  ;;  %v823_v4 = vadd.f32 %v2906_v3, %v791_v31  ;;  %v824_v44 = vadd.f32 %v2907_v2, %v792_v24  ;;  %v875_v10 = vmul.f32 %v2485_v46, %v2574_v62 }
 0x20d   : > { %v765_v28 = vadd.f32 %v757_v38, %v733_v61  ;;  %v877_v41 = vmul.f32 %v2473_v34, %v2550_v1  ;;  %v931_v40 = vmul.f32 %v2487_v47, %v671_v57  ;;  %v901_v23 = vmul.f32 %v2489_v39, %v2362_v21  ;;  %v2910_v34 = vld [vmem:[#allocation28_spill] sm:$0xff]  ;;  %v2911_v1 = vld [vmem:[#allocation22_spill] sm:$0xff]  ;;  %v2912_v21 = vld [vmem:[#allocation27_spill] sm:$0xff] }
 0x20e   : > { %1000 = vrot.lane.b32.xlu0 %v942_v42, %s1898_s15  ;;  %v766_v59 = vadd.f32 %v758_v53, %v734_v18  ;;  %v2661_v25 = vadd.f32 %v847_v17, %v823_v4  ;;  %v2663_v11 = vadd.f32 %v848_v58, %v824_v44  ;;  %v907_v36 = vadd.f32 %v2908_v15, %v875_v10  ;;  %v2913_v57 = vld [vmem:[#allocation24_spill] sm:$0xff]  ;;  %v927_v27 = vpop.permute.xlu0 %926  ;;  %v2916_v38 = vld [vmem:[#allocation35_spill] sm:$0xff] }
 0x20f   : > { %949 = vrot.lane.b32.xlu2 %v765_v28, %s1897_s11  ;;  %v909_v30 = vadd.f32 %v901_v23, %v877_v41  ;;  %v704_v46 = vmul.f32 %v2909_v14, %v641_v32  ;;  %v703_v33 = vmul.f32 %v2909_v14, %v640_v45  ;;  %v728_v47 = vmul.f32 %v2911_v1, %v2910_v34  ;;  %v2917_v42 = vld [vmem:[#allocation39_spill] sm:$0xff]  ;;  %v2918_v18 = vld [vmem:[#allocation40_spill] sm:$0xff] }
 0x210   : > { %957 = vrot.lane.b32.xlu1 %v766_v59, %s1897_s11  ;;  %v939_v62 = vadd.f32 %v931_v40, %v907_v36  ;;  %v727_v39 = vmul.f32 %v2911_v1, %v2912_v21  ;;  %v760_v6 = vmul.f32 %v2913_v57, %v676_v49  ;;  %v759_v12 = vmul.f32 %v2913_v57, %v675_v9 }
 0x211   : > { %v941_v63 = vadd.f32 %v933_v22, %v909_v30  ;;  %v736_v35 = vadd.f32 %v728_v47, %v704_v46  ;;  %v880_v0 = vmul.f32 %v2914_v8, %v641_v32  ;;  %v879_v16 = vmul.f32 %v2914_v8, %v640_v45 }
 0x212   : > { %v735_v50 = vadd.f32 %v727_v39, %v703_v33  ;;  %v936_v7 = vmul.f32 %v927_v27, %v676_v49  ;;  %v935_v43 = vmul.f32 %v927_v27, %v675_v9  ;;  %v970_v61 = vperm.slane %v2917_v42, 1  ;;  %v2921_v27 = vld [vmem:[#allocation20_spill] sm:$0xff] }
 0x213   : > { %v768_v20 = vadd.f32 %v760_v6, %v736_v35  ;;  %v912_v29 = vadd.f32 %v2915_v19, %v880_v0  ;;  %v911_v52 = vadd.f32 %v2916_v38, %v879_v16  ;;  %v971_v37 = vperm.slane %v2918_v18, 1  ;;  %v2919_v6 = vld [vmem:[#allocation19_spill] sm:$0xff] }
 0x214   : > { %v767_v13 = vadd.f32 %v759_v12, %v735_v50  ;;  %v2709_v4 = vperm.slane %v2917_v42, 2  ;;  %v2712_v2 = vperm.slane %v2918_v18, 2  ;;  %v2920_v12 = vperm.slane %v2919_v6, 0  ;;  %v2924_v42 = vld [vmem:[#allocation26_spill] sm:$0xff] }
 0x215   : > { %v944_v48 = vadd.f32 %v936_v7, %v912_v29  ;;  %v943_v31 = vadd.f32 %v935_v43, %v911_v52 }
 0x217   : > { %990 = vrot.lane.b32.xlu2 %v939_v62, %s1898_s15 }
 0x218   : > { %992 = vrot.lane.b32.xlu1 %v941_v63, %s1898_s15 }
 0x21f   : > { %959 = vrot.lane.b32.xlu2 %v768_v20, %s1897_s11 }
 0x220   : > { %951 = vrot.lane.b32.xlu1 %v767_v13, %s1897_s11  ;;  %v2922_v13 = vperm.slane %v2921_v27, 0 }
 0x227   : > { %1002 = vrot.lane.b32.xlu2 %v944_v48, %s1898_s15 }
 0x228   : > { %994 = vrot.lane.b32.xlu1 %v943_v31, %s1898_s15 }
 0x24b   : > { %v997_v32 = vpop.permute.xlu2 %996 }
 0x260   : > { %v956_v45 = vpop.permute.xlu2 %955 }
 0x262   : > { %v954_v24 = vpop.permute.xlu0 %953  ;;  %v946_v9 = vpop.permute.xlu1 %945 }
 0x263   : > { %v962_v58 = vsel %vm961_vm12, %v946_v9, %v954_v24  ;;  %v966_v3 = vsel %vm961_vm12, %v954_v24, %v946_v9 }
 0x264   : > { %v972_v15 = vmul.f32 %v970_v61, %v966_v3  ;;  %v973_v36 = vmul.f32 %v971_v37, %v962_v58 }
 0x266   : > { %v980_v47 = vadd.f32 %v972_v15, %v2554_v56  ;;  %v981_v21 = vadd.f32 %v973_v36, %v2558_v51 }
 0x269   : > { %v950_v53 = vpop.permute.xlu2 %949 }
 0x26a   : > { %v989_v49 = vpop.permute.xlu0 %988 }
 0x26b   : > { %v1005_v44 = vsel %vm1004_vm13, %v989_v49, %v997_v32  ;;  %v1009_v28 = vsel %vm1004_vm13, %v997_v32, %v989_v49  ;;  %v2923_v49 = vld [vmem:[#allocation25_spill] sm:$0xff] }
 0x26c   : > { %v1015_v46 = vmul.f32 %v2709_v4, %v1005_v44  ;;  %v1016_v62 = vmul.f32 %v2712_v2, %v1009_v28 }
 0x26e   : > { %v1023_v50 = vadd.f32 %v1015_v46, %v980_v47  ;;  %v1024_v57 = vadd.f32 %v1016_v62, %v981_v21 }
 0x271   : > { %v991_v59 = vpop.permute.xlu2 %990 }
 0x278   : > { %v999_v17 = vpop.permute.xlu0 %998 }
 0x279   : > { %v948_v10 = vpop.permute.xlu1 %947  ;;  %v1006_v41 = vsel %vm1004_vm13, %v991_v59, %v999_v17  ;;  %v1010_v40 = vsel %vm1004_vm13, %v999_v17, %v991_v59 }
 0x27a   : > { %v963_v23 = vsel %vm961_vm12, %v948_v10, %v956_v45  ;;  %v967_v22 = vsel %vm961_vm12, %v956_v45, %v948_v10  ;;  %v1017_v33 = vmul.f32 %v2709_v4, %v1006_v41  ;;  %v1018_v63 = vmul.f32 %v2712_v2, %v1010_v40 }
 0x27b   : > { %v974_v30 = vmul.f32 %v970_v61, %v967_v22  ;;  %v975_v14 = vmul.f32 %v971_v37, %v963_v23  ;;  %v1039_v41 = vperm.slane %v2919_v6, 2  ;;  %v1040_v40 = vperm.slane %v2921_v27, 2 }
 0x27d   : > { %v982_v34 = vadd.f32 %v974_v30, %v2637_v55  ;;  %v983_v1 = vadd.f32 %v975_v14, %v2639_v54 }
 0x27f   : > { %v1025_v39 = vadd.f32 %v1017_v33, %v982_v34  ;;  %v1026_v35 = vadd.f32 %v1018_v63, %v983_v1  ;;  %v2925_v33 = vld [vmem:[#allocation31_spill] sm:$0xff]  ;;  %v2926_v63 = vld [vmem:[#allocation21_spill] sm:$0xff]  ;;  %v2927_v1 = vld [vmem:[#allocation32_spill] sm:$0xff] }
 0x280   : > { %v1001_v43 = vpop.permute.xlu0 %1000  ;;  %v524_v34 = vadd.f32 %v2926_v63, %v2925_v33  ;;  %v525_v26 = vadd.f32 %v2926_v63, %v2927_v1 }
 0x281   : > { %v1031_v20 = vmul.f32 %v1025_v39, %v2920_v12  ;;  %v1032_v8 = vmul.f32 %v1026_v35, %v2922_v13 }
 0x282   : > { %v958_v0 = vpop.permute.xlu1 %957 }
 0x283   : > { %v1033_v16 = vadd.f32 %v1031_v20, %v1023_v50  ;;  %v1034_v7 = vadd.f32 %v1032_v8, %v1024_v57  ;;  %v964_v55 = vsel %vm961_vm12, %v950_v53, %v958_v0  ;;  %v968_v56 = vsel %vm961_vm12, %v958_v0, %v950_v53  ;;  %v960_v53 = vpop.permute.xlu2 %959 }
 0x284   : > { %v976_v51 = vmul.f32 %v970_v61, %v968_v56  ;;  %v977_v54 = vmul.f32 %v971_v37, %v964_v55 }
 0x286   : > { %v984_v52 = vadd.f32 %v976_v51, %v2642_v60  ;;  %v985_v48 = vadd.f32 %v977_v54, %v2645_v5 }
 0x28a   : > { %v993_v19 = vpop.permute.xlu1 %992 }
 0x28b   : > { %v1007_v29 = vsel %vm1004_vm13, %v993_v19, %v1001_v43  ;;  %v1011_v38 = vsel %vm1004_vm13, %v1001_v43, %v993_v19  ;;  %v1003_v59 = vpop.permute.xlu2 %1002 }
 0x28c   : > { %v1019_v31 = vmul.f32 %v2709_v4, %v1007_v29  ;;  %v1020_v32 = vmul.f32 %v2712_v2, %v1011_v38 }
 0x28e   : > { %v1027_v45 = vadd.f32 %v1019_v31, %v984_v52  ;;  %v1028_v24 = vadd.f32 %v1020_v32, %v985_v48 }
 0x290   : > { %v1035_v9 = vmul.f32 %v1027_v45, %v2923_v49  ;;  %v1036_v18 = vmul.f32 %v1028_v24, %v2924_v42 }
 0x292   : > { %v1037_v17 = vadd.f32 %v1035_v9, %v1033_v16  ;;  %v1038_v58 = vadd.f32 %v1036_v18, %v1034_v7  ;;  %v952_v3 = vpop.permute.xlu1 %951 }
 0x293   : > { %v965_v44 = vsel %vm961_vm12, %v952_v3, %v960_v53  ;;  %v969_v60 = vsel %vm961_vm12, %v960_v53, %v952_v3 }
 0x294   : > { %v978_v5 = vmul.f32 %v970_v61, %v969_v60  ;;  %v979_v28 = vmul.f32 %v971_v37, %v965_v44 }
 0x296   : > { %v986_v15 = vadd.f32 %v978_v5, %v2661_v25  ;;  %v987_v36 = vadd.f32 %v979_v28, %v2663_v11 }
 0x29a   : > { %v995_v10 = vpop.permute.xlu1 %994 }
 0x29b   : > { %v1008_v23 = vsel %vm1004_vm13, %v995_v10, %v1003_v59  ;;  %v1012_v22 = vsel %vm1004_vm13, %v1003_v59, %v995_v10 }
 0x29c   : > { %v1021_v61 = vmul.f32 %v2709_v4, %v1008_v23  ;;  %v1022_v37 = vmul.f32 %v2712_v2, %v1012_v22 }
 0x29e   : > { %v1029_v30 = vadd.f32 %v1021_v61, %v986_v15  ;;  %v1030_v14 = vadd.f32 %v1022_v37, %v987_v36 }
 0x2a0   : > { %v1041_v46 = vmul.f32 %v1039_v41, %v1029_v30  ;;  %v1042_v62 = vmul.f32 %v1040_v40, %v1030_v14  ;;  %1050 = sbr.rel (%p1537_p8) target bundleno = 680 (0x2a8), region = 90 }
 0x2a2   : > { %v1043_v47 = vadd.f32 %v1041_v46, %v1037_v17  ;;  %v1044_v21 = vadd.f32 %v1042_v62, %v1038_v58 }
 0x2a4   : > { %v1045_v39 = vadd.f32 %v1043_v47, %v524_v34  ;;  %v1046_v25 = vadd.f32 %v1044_v21, %v525_v26 }
 0x2a5   : > { %v1899_v11 = vmov 0.0  }
 0x2a6   : > { %1051 = vst [vmem:[%s2771_s10] sm:$0xff] %v1899_v11 }
 0x2a7   : > { %1052 = vst [vmem:[%s2771_s10 + $0x8] sm:$0xff] %v1899_v11 }
 0x2a8 PF: > { %v1075_v4 = vand.u32 4294901760, %v1045_v39  ;;  %v1055_v2 = vld [vmem:[%s2061_s9] sm:$0xff]  ;;  %vm1056_vm14 = vcmask 64512   ;;  %v1221_v35 = vand.u32 4294901760, %v1046_v25  ;;  %s1543_s24 = sshll.u32 %s1867_s25, 4  ;;  %s1370_s27 = sshll.u32 %s2771_s10, 4  ;;  %s1371_s27 = int_to_ptr.vmem [resolvable:$true] %s1370_s27 }
 0x2a9   : > { %v1058_v50 = vsel %vm1056_vm14, %v1055_v2, 0  ;;  %s1368_s14 = scalar_lea.hbm %s2840_s5, %s1543_s24  ;;  %s1357_s25 = scalar_lea.sflag [#allocation4], %s382_s29 }
 0x2aa   : > { %v1102_v57 = vsub.f32 %v1045_v39, %v1075_v4  ;;  %v1077_v6 = vand.u32 4294901760, %v1058_v50  ;;  %1152 = vmatpush.msra.mxu3 %v1075_v4  ;;  %1076 = vmatpush.msra.mxu0 %v1075_v4  ;;  %v1248_v12 = vsub.f32 %v1046_v25, %v1221_v35  ;;  %s1372_s6 = sshll.u32 %s1368_s14, 4  ;;  %s1773_s23 = scalar_lea.hbm %s2840_s5, 32  ;;  %s1373_s6 = int_to_ptr.hbm [resolvable:$true] %s1372_s6 }
 0x2ab   : > { %s1767_s7 = sshra.s32 %s1373_s6, 4  ;;  %s1768_s7 = int_to_ptr.hbm [resolvable:$true] %s1767_s7 }
 0x2ac   : > { %1129 = vmatpush.msra.mxu2 %v1102_v57  ;;  %v1078_v20 = vsub.f32 %v1058_v50, %v1077_v6  ;;  %v1103_v27 = vand.u32 4294901760, %v1102_v57  ;;  %v1249_v13 = vand.u32 4294901760, %v1248_v12  ;;  %s1769_s12 = scalar_lea.hbm %s1768_s7, 16  ;;  %p1774_p13 = scmp.lt.s32.totalorder %s1768_s7, %s2840_s5 }
 0x2ad   : > { %v1053_v53 = vld [vmem:[%s2771_s10] sm:$0xff]  ;;  %p1770_p9 = scmp.ne.s32.totalorder %s1768_s7, %s1769_s12  ;;  %p1775_p0 = scmp.lt.s32.totalorder %s1773_s23, %s1769_s12 }
 0x2ae   : > { %1222 = vmatpush.msrb.mxu2 %v1221_v35  ;;  %v1079_v8 = vand.u32 4294901760, %v1078_v20  ;;  %v1104_v0 = vsub.f32 %v1102_v57, %v1103_v27  ;;  %1178 = vmatpush.msrb.mxu0 %v1103_v27  ;;  %v1250_v16 = vsub.f32 %v1248_v12, %v1249_v13  ;;  %v1054_v59 = vld [vmem:[%s2771_s10 + $0x8] sm:$0xff] }
 0x2af   : > { %1132 = vmatmul.f32.vlgmr.msra.gmra.mxu2 %v1078_v20  ;;  %p1771_p10 = pnand %p1770_p9, %p2018_p12  ;;  %p1776_p2 = por %p1775_p0, %p1774_p13 }
 0x2b0   : > { %1324 = vmatpush.msra.mxu2 %v1249_v13  ;;  %1156 = vmatmul.f32.vlgmr.msra.gmra.mxu3 %v1079_v8  ;;  %v1105_v7 = vand.u32 4294901760, %v1104_v0  ;;  %v1080_v55 = vsub.f32 %v1078_v20, %v1079_v8  ;;  %v1251_v56 = vand.u32 4294901760, %v1250_v16 }
 0x2b1   : > { %p1772_p11 = pneg %p1771_p10 }
 0x2b2   : > { %1106 = vmatpush.msra.mxu1 %v1105_v7  ;;  %v1081_v51 = vand.u32 4294901760, %v1080_v55  ;;  %1252 = vmatpush.msrb.mxu3 %v1251_v56 }
 0x2b3   : > { %1108 = vmatmul.f32.vlgmr.msra.gmra.mxu1 %v1077_v6  ;;  %p1777_p4 = pnand %p1776_p2, %p1772_p11 }
 0x2b4   : > { %1346 = vmatpush.msra.mxu3 %v1221_v35  ;;  %1082 = vmatmul.f32.vlgmr.msra.gmra.mxu0 %v1081_v51 }
 0x2b5   : > { %1200 = vmatpush.msrb.mxu1 %v1075_v4  ;;  %1275 = vmatpush.msra.mxu0 %v1248_v12 }
 0x2b7   : > { %1298 = vmatpush.msra.mxu1 %v1221_v35  ;;  %1228 = vmatmul.f32.vlgmr.msrb.gmra.mxu2 %v1081_v51 }
 0x2b8   : > { %1254 = vmatmul.f32.vlgmr.msrb.gmra.mxu3 %v1077_v6 }
 0x2bb   : > { %1202 = vmatmul.f32.vlgmr.msrb.gmra.mxu1 %v1077_v6 }
 0x2bc   : > { %1180 = vmatmul.f32.vlgmr.msrb.gmra.mxu0 %v1077_v6 }
 0x2bf   : > { %1326 = vmatmul.f32.vlgmr.msra.gmra.mxu2 %v1077_v6 }
 0x2c0   : > { %1348 = vmatmul.f32.vlgmr.msra.gmra.mxu3 %v1077_v6 }
 0x2c3   : > { %1302 = vmatmul.f32.vlgmr.msra.gmra.mxu1 %v1079_v8 }
 0x2c4   : > { %1278 = vmatmul.f32.vlgmr.msra.gmra.mxu0 %v1078_v20 }
 0x330   : > { %v1109_v54 = vpop.f32.mrf.mxu1 }
 0x331   : > { %v1083_v43 = vpop.f32.mrf.mxu0 }
 0x332   : > { %v1133_v19 = vpop.f32.mrf.mxu2  ;;  %v1110_v29 = vadd.f32 %v1109_v54, %v1083_v43 }
 0x333   : > { %v1157_v38 = vpop.f32.mrf.mxu3 }
 0x334   : > { %v1134_v52 = vadd.f32 %v1133_v19, %v1110_v29 }
 0x336   : > { %v1158_v48 = vadd.f32 %v1157_v38, %v1134_v52 }
 0x338   : > { %v1203_v31 = vpop.f32.mrf.mxu1 }
 0x339   : > { %v1181_v32 = vpop.f32.mrf.mxu0 }
 0x33a   : > { %v1229_v45 = vpop.f32.mrf.mxu2  ;;  %v1182_v24 = vadd.f32 %v1181_v32, %v1158_v48 }
 0x33b   : > { %v1255_v9 = vpop.f32.mrf.mxu3 }
 0x33c   : > { %v1204_v49 = vadd.f32 %v1203_v31, %v1182_v24  ;;  %v1256_v18 = vadd.f32 %v1255_v9, %v1229_v45 }
 0x33e   : > { %v1352_v42 = vadd.f32 %v1204_v49, %v1053_v53 }
 0x340   : > { %1354 = vst [vmem:[%s2771_s10] sm:$0xff] %v1352_v42  ;;  %v1303_v58 = vpop.f32.mrf.mxu1 }
 0x341   : > { %v1279_v17 = vpop.f32.mrf.mxu0 }
 0x342   : > { %v1280_v3 = vadd.f32 %v1279_v17, %v1256_v18  ;;  %v1327_v44 = vpop.f32.mrf.mxu2 }
 0x343   : > { %v1349_v5 = vpop.f32.mrf.mxu3 }
 0x344   : > { %v1304_v60 = vadd.f32 %v1303_v58, %v1280_v3 }
 0x346   : > { %v1328_v28 = vadd.f32 %v1327_v44, %v1304_v60 }
 0x348   : > { %v1350_v10 = vadd.f32 %v1349_v5, %v1328_v28 }
 0x34a   : > { %v1353_v41 = vadd.f32 %v1350_v10, %v1054_v59 }
 0x34c   : > { %1355 = vst [vmem:[%s2771_s10 + $0x8] sm:$0xff] %v1353_v41 }
 0x34d   : > { %1780 = shalt.err (!%p1777_p4)
}
 0x34e   : > { %1548 = dma.vmem_to_hbm [thread:$0]  (%p2018_p12), %s1371_s27, 256, %s1373_s6, %s1357_s25  }
 0x34f PF: > { %p1554_p5 = scmp.ge.s32.totalorder %s1879_s28, 2  ;;  %s1384_s15 = sand.u32 1, %s1839_s18  }
 0x350   : > { %s1385_s29 = scalar_lea.sflag [#allocation4], %s1384_s15 }
 0x351   : > { %p1551_p6 = pnand %p1554_p5, %p2024_p1 }
 0x353   : > { %p1552_p3 = pneg %p1551_p6 }
 0x355   : > { %1834 = dma.done.wait (%p1552_p3), %s1385_s29, 256  }
 0x356   : > { %1836 = vsyncadd (%p1552_p3), %s1385_s29, 4294967040  ;;  %s24_s28 = sadd.s32 1, %s1879_s28   ;;  %s2928_s8 = sld [smem:[#allocation18_spill]] }
 0x357   : > { %p21_p7 = scmp.ge.s32.totalorder %s24_s28, 6   ;;  %s2929_s16 = sld [smem:[#allocation12_spill]] }
 0x358   : > { %s2930_s23 = sld [smem:[#allocation17_spill]]  ;;  %s2935_s18 = smov %s1843_s19 }
 0x359   : > { %s2931_s24 = sld [smem:[#allocation13_spill]]  ;;  %s2936_s19 = smov %s1847_s20 }
 0x35a   : > { %s2932_s25 = sld [smem:[#allocation14_spill]]  ;;  %s2938_s21 = smov %s1855_s22 }
 0x35b   : > { %s2933_s26 = sld [smem:[#allocation15_spill]]  ;;  %23 = sbr.rel (!%p21_p7) target bundleno = 11 (0xb), region = 154 }
 0x35c   : > { %s2934_s27 = sld [smem:[#allocation16_spill]]  ;;  %s2937_s20 = smov %s2928_s8 }
 0x35d   : > { %s2939_s22 = smov %s2929_s16 }
 0x360   :  { %1391 = vsyncpa [#allocation3], 1 }
 0x361   :  { %1393 = vsyncpa [#allocation3 + $0x1], 1 }
 0x362   :  { %1394 = vsyncpa [#allocation7], 1 }
 0x363   :  { %1396 = vsyncpa [#allocation7 + $0x1], 1 }
 0x364   :  { %1397 = vsyncpa [#allocation4], 1 }
 0x365   :  { %1399 = vsyncpa [#allocation4 + $0x1], 1 }

</bundles_post_ra>
